<compile_context>
chip_gen: v7x
topology: tpu7x:2x2x1
jax: 0.10.0
libtpu: 0.0.40
codegen_flags: <defaults>
</compile_context>

<pallas_src>
import functools

import jax
import jax.numpy as jnp
from jax.experimental import pallas as pl
from jax.experimental.pallas import tpu as pltpu

LANE = 128   # lane padding for every weight's output (last) dim
KPAD = 16    # sublane padding for contraction dims (one bf16 row-group)


def _round_up(n, m):
    return ((n + m - 1) // m) * m


def _pad2d(a, shape):
    return jnp.pad(a, [(0, s - d) for d, s in zip(a.shape, shape)])


def fused_simple_nn_kernel(x_ref, *refs):
    """All residual blocks fused, weights double-buffered from HBM.

    refs = 4 param refs per block (wcat_hbm, bcat_vmem, w2_hbm, b2_vmem),
           then out_ref, then scratch (wbuf, w2buf, sems).

    Per block (lane dims padded to 128, K dims padded to 16, pad entries zero):
        hr  = x[:, :K] @ [W1 | Ws] + [b1 | bs]     (one merged bf16 MXU matmul)
        h   = relu(hr[:, :out_p]) ; res = hr[:, out_p:]
        out = h[:, :K2] @ W2 + b2 + res
        out = relu(out)                            (skipped on the last block)
    """
    out_ref = refs[-4]
    wbuf, w2buf, sems = refs[-3], refs[-2], refs[-1]
    p = refs[:-4]
    n_blocks = len(p) // 4

    def weight_copies(i, slot):
        wc_hbm, w2_hbm = p[4 * i], p[4 * i + 2]
        kw, nw = wc_hbm.shape
        k2, n2 = w2_hbm.shape
        return (
            pltpu.make_async_copy(wc_hbm, wbuf.at[slot, :kw, :nw], sems.at[0, slot]),
            pltpu.make_async_copy(w2_hbm, w2buf.at[slot, :k2, :n2], sems.at[1, slot]),
        )

    # Prime the pipeline: start block 0's weight DMAs immediately.
    for c in weight_copies(0, 0):
        c.start()

    x = x_ref[...]                           # (M, K0) f32 activations
    for i in range(n_blocks):                # unrolled at trace time
        slot = i % 2
        for c in weight_copies(i, slot):     # wait for this block's weights
            c.wait()
        if i + 1 < n_blocks:                 # prefetch next block's weights
            for c in weight_copies(i + 1, 1 - slot):
                c.start()

        kw, nw = p[4 * i].shape              # wcat = (K, 2*out_p)
        k2, out_p = p[4 * i + 2].shape       # W2   = (K2, out_p)
        split = nw // 2                      # [W1 | Ws] split at lane-padded out_p
        bcat = p[4 * i + 1][...]             # (1, 2*out_p) f32
        b2 = p[4 * i + 3][...]               # (1, out_p)   f32
        wcat = wbuf[slot, :kw, :nw]          # bf16
        w2 = w2buf[slot, :k2, :out_p]        # bf16

        hr = jnp.dot(x[:, :kw].astype(jnp.bfloat16), wcat,
                     preferred_element_type=jnp.float32) + bcat
        h = jnp.maximum(hr[:, :split], 0.0)          # linear1 + ReLU
        res = hr[:, split:]                          # shortcut projection
        out = jnp.dot(h[:, :k2].astype(jnp.bfloat16), w2,
                      preferred_element_type=jnp.float32) + b2 + res
        if i + 1 < n_blocks:
            out = jnp.maximum(out, 0.0)
        x = out

    out_ref[...] = x[:, :out_ref.shape[1]].astype(out_ref.dtype)


@functools.partial(jax.jit, static_argnames=("output_size",))
def simple_nn_forward(x, params, *, output_size):
    batch, in_size = x.shape
    batch_p = _round_up(batch, 8)
    in_p = params[0].shape[0]                # first block's (sublane-padded) K
    if (batch_p, in_p) != (batch, in_size):  # no-op (no XLA op) when aligned
        x = jnp.pad(x, ((0, batch_p - batch), (0, in_p - in_size)))

    n_blocks = len(params) // 4
    max_kw = max(params[4 * i].shape[0] for i in range(n_blocks))
    max_nw = max(params[4 * i].shape[1] for i in range(n_blocks))
    max_k2 = max(params[4 * i + 2].shape[0] for i in range(n_blocks))
    max_n2 = max(params[4 * i + 2].shape[1] for i in range(n_blocks))
    wdtype = params[0].dtype

    vmem = pl.BlockSpec(memory_space=pltpu.MemorySpace.VMEM)
    hbm = pl.BlockSpec(memory_space=pl.ANY)
    in_specs = [vmem]
    for _ in range(n_blocks):
        in_specs += [hbm, vmem, hbm, vmem]   # weights in HBM, biases in VMEM

    out = pl.pallas_call(
        fused_simple_nn_kernel,
        out_shape=jax.ShapeDtypeStruct((batch_p, output_size), jnp.float32),
        in_specs=in_specs,
        out_specs=vmem,
        scratch_shapes=[
            pltpu.VMEM((2, max_kw, max_nw), wdtype),   # double-buffered wcat
            pltpu.VMEM((2, max_k2, max_n2), wdtype),   # double-buffered W2
            pltpu.SemaphoreType.DMA((2, 2)),           # [kind, slot]
        ],
    )(x, *params)
    return out if batch_p == batch else out[:batch]


def _init_linear(key, in_size, out_size):
    """nn.Linear-style init: uniform(-1/sqrt(in), 1/sqrt(in)); W stored (in, out)."""
    kw, kb = jax.random.split(key)
    bound = 1.0 / (in_size ** 0.5)
    w = jax.random.uniform(kw, (in_size, out_size), jnp.float32, -bound, bound)
    b = jax.random.uniform(kb, (out_size,), jnp.float32, -bound, bound)
    return w, b


def init_simple_nn(key, input_size, output_size, r1=256, r2=128, r3=64, r4=32):
    """Flat tuple of pre-fused params, 4 per block:
       wcat=(round_up(in,16), 2*round_up(out,128))=[W1|Ws]  bf16,
       bcat=(1, 2*out_p) f32, W2=(round_up(out,16), out_p) bf16, b2=(1, out_p) f32."""
    dims = [input_size, r1, r2, r3, r4, output_size]
    keys = jax.random.split(key, len(dims) - 1)
    params = []
    for i, k in enumerate(keys):
        ins, outs = dims[i], dims[i + 1]
        k1, k2, k3 = jax.random.split(k, 3)
        w1, b1 = _init_linear(k1, ins, outs)
        w2, b2 = _init_linear(k2, outs, outs)
        ws, bs = _init_linear(k3, ins, outs)
        kin = _round_up(ins, KPAD)       # contraction dims: sublane padding only
        k2in = _round_up(outs, KPAD)
        out_p = _round_up(outs, LANE)    # output dims: lane padding to 128
        wcat = jnp.concatenate(
            [_pad2d(w1, (kin, out_p)), _pad2d(ws, (kin, out_p))], axis=1
        ).astype(jnp.bfloat16)
        bcat = jnp.concatenate(
            [jnp.pad(b1, (0, out_p - outs)), jnp.pad(bs, (0, out_p - outs))]
        )[None, :]
        w2p = _pad2d(w2, (k2in, out_p)).astype(jnp.bfloat16)
        b2p = jnp.pad(b2, (0, out_p - outs))[None, :]
        params.extend([wcat, bcat, w2p, b2p])
    return tuple(params)


def simple_nn_reference(x, params, *, output_size):
    """Pure-JAX reference (same padded params, same bf16-operand math)."""
    n_blocks = len(params) // 4
    kin0 = params[0].shape[0]
    xr = x.astype(jnp.float32)
    if xr.shape[1] != kin0:
        xr = jnp.pad(xr, ((0, 0), (0, kin0 - xr.shape[1])))
    for i in range(n_blocks):
        wcat, bcat, w2, b2 = params[4 * i: 4 * i + 4]
        kw, nw = wcat.shape
        k2, out_p = w2.shape
        split = nw // 2
        hr = jnp.dot(xr[:, :kw].astype(jnp.bfloat16), wcat,
                     preferred_element_type=jnp.float32) + bcat
        h = jnp.maximum(hr[:, :split], 0.0)
        res = hr[:, split:]
        xr = jnp.dot(h[:, :k2].astype(jnp.bfloat16), w2,
                     preferred_element_type=jnp.float32) + b2 + res
        if i + 1 < n_blocks:
            xr = jnp.maximum(xr, 0.0)
    return xr[:, :output_size]


if __name__ == "__main__":
    key = jax.random.PRNGKey(0)
    k_params, k_x = jax.random.split(key)

    batch = 8          # NOTE: for throughput, batch 128-256 rows per call if possible
    input_size = 32
    output_size = 10

    params = init_simple_nn(k_params, input_size, output_size)
    x = jax.random.normal(k_x, (batch, input_size), jnp.float32)

    out = simple_nn_forward(x, params, output_size=output_size)
    jax.block_until_ready(out)

    assert out.shape == (batch, output_size), out.shape
    assert out.dtype == jnp.float32, out.dtype

    ref = simple_nn_reference(x, params, output_size=output_size)
    assert jnp.allclose(out, ref, rtol=2e-3, atol=2e-3), float(
        jnp.max(jnp.abs(out - ref)))

    print("KERNEL_OK")
</pallas_src>

<mosaic_0001>
module attributes {stable_mosaic.version = 11 : i64} {
  func.func @fused_simple_nn_kernel(%arg0: memref<8x32xf32, #tpu.memory_space<vmem>>, %arg1: memref<32x512xbf16, #tpu.memory_space<any>>, %arg2: memref<1x512xf32, #tpu.memory_space<vmem>>, %arg3: memref<256x256xbf16, #tpu.memory_space<any>>, %arg4: memref<1x256xf32, #tpu.memory_space<vmem>>, %arg5: memref<256x256xbf16, #tpu.memory_space<any>>, %arg6: memref<1x256xf32, #tpu.memory_space<vmem>>, %arg7: memref<128x128xbf16, #tpu.memory_space<any>>, %arg8: memref<1x128xf32, #tpu.memory_space<vmem>>, %arg9: memref<128x256xbf16, #tpu.memory_space<any>>, %arg10: memref<1x256xf32, #tpu.memory_space<vmem>>, %arg11: memref<64x128xbf16, #tpu.memory_space<any>>, %arg12: memref<1x128xf32, #tpu.memory_space<vmem>>, %arg13: memref<64x256xbf16, #tpu.memory_space<any>>, %arg14: memref<1x256xf32, #tpu.memory_space<vmem>>, %arg15: memref<32x128xbf16, #tpu.memory_space<any>>, %arg16: memref<1x128xf32, #tpu.memory_space<vmem>>, %arg17: memref<32x256xbf16, #tpu.memory_space<any>>, %arg18: memref<1x256xf32, #tpu.memory_space<vmem>>, %arg19: memref<16x128xbf16, #tpu.memory_space<any>>, %arg20: memref<1x128xf32, #tpu.memory_space<vmem>>, %arg21: memref<8x10xf32, #tpu.memory_space<vmem>>, %arg22: memref<2x256x512xbf16, #tpu.memory_space<vmem>>, %arg23: memref<2x256x256xbf16, #tpu.memory_space<vmem>>, %arg24: memref<2x2x!tpu.dma_semaphore, #tpu.memory_space<semaphore_mem>>) attributes {dimension_semantics = [], scalar_prefetch = 0 : i64, scratch_operands = 3 : i64, tpu.core_type = #tpu.core_type<tc>} {
    %c0_i32 = arith.constant 0 : i32
    %c0_i32_0 = arith.constant 0 : i32
    %c0_i32_1 = arith.constant 0 : i32
    %c0_i32_2 = arith.constant 0 : i32
    %c0_i32_3 = arith.constant 0 : i32
    %0 = tpu.memref_slice %arg22[%c0_i32, %c0_i32_2, %c0_i32_3] : memref<2x256x512xbf16, #tpu.memory_space<vmem>> -> memref<1x32x512xbf16, #tpu.memory_space<vmem>>
    %1 = tpu.memref_squeeze %0 : memref<1x32x512xbf16, #tpu.memory_space<vmem>> -> memref<32x512xbf16, #tpu.memory_space<vmem>>
    %2 = tpu.memref_slice %arg24[%c0_i32_0, %c0_i32_1] : memref<2x2x!tpu.dma_semaphore, #tpu.memory_space<semaphore_mem>> -> memref<1x1x!tpu.dma_semaphore, #tpu.memory_space<semaphore_mem>>
    %3 = tpu.memref_squeeze %2 : memref<1x1x!tpu.dma_semaphore, #tpu.memory_space<semaphore_mem>> -> memref<!tpu.dma_semaphore, #tpu.memory_space<semaphore_mem>>
    tpu.enqueue_dma source(%arg1 : memref<32x512xbf16, #tpu.memory_space<any>>) target(%1 : memref<32x512xbf16, #tpu.memory_space<vmem>>) target_semaphore(%3 : memref<!tpu.dma_semaphore, #tpu.memory_space<semaphore_mem>>)
    %c0_i32_4 = arith.constant 0 : i32
    %c1_i32 = arith.constant 1 : i32
    %c0_i32_5 = arith.constant 0 : i32
    %c0_i32_6 = arith.constant 0 : i32
    %c0_i32_7 = arith.constant 0 : i32
    %4 = tpu.memref_slice %arg23[%c0_i32_4, %c0_i32_6, %c0_i32_7] : memref<2x256x256xbf16, #tpu.memory_space<vmem>> -> memref<1x256x256xbf16, #tpu.memory_space<vmem>>
    %5 = tpu.memref_squeeze %4 : memref<1x256x256xbf16, #tpu.memory_space<vmem>> -> memref<256x256xbf16, #tpu.memory_space<vmem>>
    %6 = tpu.memref_slice %arg24[%c1_i32, %c0_i32_5] : memref<2x2x!tpu.dma_semaphore, #tpu.memory_space<semaphore_mem>> -> memref<1x1x!tpu.dma_semaphore, #tpu.memory_space<semaphore_mem>>
    %7 = tpu.memref_squeeze %6 : memref<1x1x!tpu.dma_semaphore, #tpu.memory_space<semaphore_mem>> -> memref<!tpu.dma_semaphore, #tpu.memory_space<semaphore_mem>>
    tpu.enqueue_dma source(%arg3 : memref<256x256xbf16, #tpu.memory_space<any>>) target(%5 : memref<256x256xbf16, #tpu.memory_space<vmem>>) target_semaphore(%7 : memref<!tpu.dma_semaphore, #tpu.memory_space<semaphore_mem>>)
    %c0 = arith.constant 0 : index
    %c0_8 = arith.constant 0 : index
    %8 = vector.load %arg0[%c0, %c0_8] : memref<8x32xf32, #tpu.memory_space<vmem>>, vector<8x32xf32>
    %c0_i32_9 = arith.constant 0 : i32
    %c0_i32_10 = arith.constant 0 : i32
    %c0_i32_11 = arith.constant 0 : i32
    %c0_i32_12 = arith.constant 0 : i32
    %c0_i32_13 = arith.constant 0 : i32
    %9 = tpu.memref_slice %arg22[%c0_i32_9, %c0_i32_12, %c0_i32_13] : memref<2x256x512xbf16, #tpu.memory_space<vmem>> -> memref<1x32x512xbf16, #tpu.memory_space<vmem>>
    %10 = tpu.memref_squeeze %9 : memref<1x32x512xbf16, #tpu.memory_space<vmem>> -> memref<32x512xbf16, #tpu.memory_space<vmem>>
    %11 = tpu.memref_slice %arg24[%c0_i32_10, %c0_i32_11] : memref<2x2x!tpu.dma_semaphore, #tpu.memory_space<semaphore_mem>> -> memref<1x1x!tpu.dma_semaphore, #tpu.memory_space<semaphore_mem>>
    %12 = tpu.memref_squeeze %11 : memref<1x1x!tpu.dma_semaphore, #tpu.memory_space<semaphore_mem>> -> memref<!tpu.dma_semaphore, #tpu.memory_space<semaphore_mem>>
    tpu.wait_dma2 semaphore(%12 : memref<!tpu.dma_semaphore, #tpu.memory_space<semaphore_mem>>) src(%arg1 : memref<32x512xbf16, #tpu.memory_space<any>>) dst(%10 : memref<32x512xbf16, #tpu.memory_space<vmem>>)
    %c0_i32_14 = arith.constant 0 : i32
    %c1_i32_15 = arith.constant 1 : i32
    %c0_i32_16 = arith.constant 0 : i32
    %c0_i32_17 = arith.constant 0 : i32
    %c0_i32_18 = arith.constant 0 : i32
    %13 = tpu.memref_slice %arg23[%c0_i32_14, %c0_i32_17, %c0_i32_18] : memref<2x256x256xbf16, #tpu.memory_space<vmem>> -> memref<1x256x256xbf16, #tpu.memory_space<vmem>>
    %14 = tpu.memref_squeeze %13 : memref<1x256x256xbf16, #tpu.memory_space<vmem>> -> memref<256x256xbf16, #tpu.memory_space<vmem>>
    %15 = tpu.memref_slice %arg24[%c1_i32_15, %c0_i32_16] : memref<2x2x!tpu.dma_semaphore, #tpu.memory_space<semaphore_mem>> -> memref<1x1x!tpu.dma_semaphore, #tpu.memory_space<semaphore_mem>>
    %16 = tpu.memref_squeeze %15 : memref<1x1x!tpu.dma_semaphore, #tpu.memory_space<semaphore_mem>> -> memref<!tpu.dma_semaphore, #tpu.memory_space<semaphore_mem>>
    tpu.wait_dma2 semaphore(%16 : memref<!tpu.dma_semaphore, #tpu.memory_space<semaphore_mem>>) src(%arg3 : memref<256x256xbf16, #tpu.memory_space<any>>) dst(%14 : memref<256x256xbf16, #tpu.memory_space<vmem>>)
    %c1_i32_19 = arith.constant 1 : i32
    %c0_i32_20 = arith.constant 0 : i32
    %c1_i32_21 = arith.constant 1 : i32
    %c0_i32_22 = arith.constant 0 : i32
    %c0_i32_23 = arith.constant 0 : i32
    %17 = tpu.memref_slice %arg22[%c1_i32_19, %c0_i32_22, %c0_i32_23] : memref<2x256x512xbf16, #tpu.memory_space<vmem>> -> memref<1x256x256xbf16, #tpu.memory_space<vmem>>
    %18 = tpu.memref_squeeze %17 : memref<1x256x256xbf16, #tpu.memory_space<vmem>> -> memref<256x256xbf16, #tpu.memory_space<vmem>>
    %19 = tpu.memref_slice %arg24[%c0_i32_20, %c1_i32_21] : memref<2x2x!tpu.dma_semaphore, #tpu.memory_space<semaphore_mem>> -> memref<1x1x!tpu.dma_semaphore, #tpu.memory_space<semaphore_mem>>
    %20 = tpu.memref_squeeze %19 : memref<1x1x!tpu.dma_semaphore, #tpu.memory_space<semaphore_mem>> -> memref<!tpu.dma_semaphore, #tpu.memory_space<semaphore_mem>>
    tpu.enqueue_dma source(%arg5 : memref<256x256xbf16, #tpu.memory_space<any>>) target(%18 : memref<256x256xbf16, #tpu.memory_space<vmem>>) target_semaphore(%20 : memref<!tpu.dma_semaphore, #tpu.memory_space<semaphore_mem>>)
    %c1_i32_24 = arith.constant 1 : i32
    %c1_i32_25 = arith.constant 1 : i32
    %c1_i32_26 = arith.constant 1 : i32
    %c0_i32_27 = arith.constant 0 : i32
    %c0_i32_28 = arith.constant 0 : i32
    %21 = tpu.memref_slice %arg23[%c1_i32_24, %c0_i32_27, %c0_i32_28] : memref<2x256x256xbf16, #tpu.memory_space<vmem>> -> memref<1x128x128xbf16, #tpu.memory_space<vmem>>
    %22 = tpu.memref_squeeze %21 : memref<1x128x128xbf16, #tpu.memory_space<vmem>> -> memref<128x128xbf16, #tpu.memory_space<vmem>>
    %23 = tpu.memref_slice %arg24[%c1_i32_25, %c1_i32_26] : memref<2x2x!tpu.dma_semaphore, #tpu.memory_space<semaphore_mem>> -> memref<1x1x!tpu.dma_semaphore, #tpu.memory_space<semaphore_mem>>
    %24 = tpu.memref_squeeze %23 : memref<1x1x!tpu.dma_semaphore, #tpu.memory_space<semaphore_mem>> -> memref<!tpu.dma_semaphore, #tpu.memory_space<semaphore_mem>>
    tpu.enqueue_dma source(%arg7 : memref<128x128xbf16, #tpu.memory_space<any>>) target(%22 : memref<128x128xbf16, #tpu.memory_space<vmem>>) target_semaphore(%24 : memref<!tpu.dma_semaphore, #tpu.memory_space<semaphore_mem>>)
    %c0_29 = arith.constant 0 : index
    %c0_30 = arith.constant 0 : index
    %25 = vector.load %arg2[%c0_29, %c0_30] : memref<1x512xf32, #tpu.memory_space<vmem>>, vector<1x512xf32>
    %c0_31 = arith.constant 0 : index
    %c0_32 = arith.constant 0 : index
    %26 = vector.load %arg4[%c0_31, %c0_32] : memref<1x256xf32, #tpu.memory_space<vmem>>, vector<1x256xf32>
    %c0_33 = arith.constant 0 : index
    %c0_34 = arith.constant 0 : index
    %c0_35 = arith.constant 0 : index
    %27 = vector.load %arg22[%c0_33, %c0_34, %c0_35] : memref<2x256x512xbf16, #tpu.memory_space<vmem>>, vector<1x32x512xbf16>
    %28 = vector.shape_cast %27 : vector<1x32x512xbf16> to vector<32x512xbf16>
    %c0_36 = arith.constant 0 : index
    %c0_37 = arith.constant 0 : index
    %c0_38 = arith.constant 0 : index
    %29 = vector.load %arg23[%c0_36, %c0_37, %c0_38] : memref<2x256x256xbf16, #tpu.memory_space<vmem>>, vector<1x256x256xbf16>
    %30 = vector.shape_cast %29 : vector<1x256x256xbf16> to vector<256x256xbf16>
    %31 = arith.truncf %8 : vector<8x32xf32> to vector<8x32xbf16>
    %cst = arith.constant dense<0.000000e+00> : vector<8x512xf32>
    %32 = tpu.matmul %31, %28, %cst {dimension_numbers = #tpu.dot_dimension_numbers<[1], [0], [0], [1], [0, 0, 1, 1], [], []>} : vector<8x32xbf16>, vector<32x512xbf16>, vector<8x512xf32> -> vector<8x512xf32>
    %33 = vector.broadcast %25 : vector<1x512xf32> to vector<8x512xf32>
    %34 = arith.addf %32, %33 : vector<8x512xf32>
    %35 = vector.extract_strided_slice %34 {offsets = [0, 0], sizes = [8, 256], strides = [1, 1]} : vector<8x512xf32> to vector<8x256xf32>
    %cst_39 = arith.constant 0.000000e+00 : f32
    %36 = vector.broadcast %cst_39 : f32 to vector<8x256xf32>
    %37 = arith.maximumf %35, %36 : vector<8x256xf32>
    %38 = vector.extract_strided_slice %34 {offsets = [0, 256], sizes = [8, 256], strides = [1, 1]} : vector<8x512xf32> to vector<8x256xf32>
    %39 = arith.truncf %37 : vector<8x256xf32> to vector<8x256xbf16>
    %cst_40 = arith.constant dense<0.000000e+00> : vector<8x256xf32>
    %40 = tpu.matmul %39, %30, %cst_40 {dimension_numbers = #tpu.dot_dimension_numbers<[1], [0], [0], [1], [0, 0, 1, 1], [], []>} : vector<8x256xbf16>, vector<256x256xbf16>, vector<8x256xf32> -> vector<8x256xf32>
    %41 = vector.broadcast %26 : vector<1x256xf32> to vector<8x256xf32>
    %42 = arith.addf %40, %41 : vector<8x256xf32>
    %43 = arith.addf %42, %38 : vector<8x256xf32>
    %cst_41 = arith.constant 0.000000e+00 : f32
    %44 = vector.broadcast %cst_41 : f32 to vector<8x256xf32>
    %45 = arith.maximumf %43, %44 : vector<8x256xf32>
    %c1_i32_42 = arith.constant 1 : i32
    %c0_i32_43 = arith.constant 0 : i32
    %c1_i32_44 = arith.constant 1 : i32
    %c0_i32_45 = arith.constant 0 : i32
    %c0_i32_46 = arith.constant 0 : i32
    %46 = tpu.memref_slice %arg22[%c1_i32_42, %c0_i32_45, %c0_i32_46] : memref<2x256x512xbf16, #tpu.memory_space<vmem>> -> memref<1x256x256xbf16, #tpu.memory_space<vmem>>
    %47 = tpu.memref_squeeze %46 : memref<1x256x256xbf16, #tpu.memory_space<vmem>> -> memref<256x256xbf16, #tpu.memory_space<vmem>>
    %48 = tpu.memref_slice %arg24[%c0_i32_43, %c1_i32_44] : memref<2x2x!tpu.dma_semaphore, #tpu.memory_space<semaphore_mem>> -> memref<1x1x!tpu.dma_semaphore, #tpu.memory_space<semaphore_mem>>
    %49 = tpu.memref_squeeze %48 : memref<1x1x!tpu.dma_semaphore, #tpu.memory_space<semaphore_mem>> -> memref<!tpu.dma_semaphore, #tpu.memory_space<semaphore_mem>>
    tpu.wait_dma2 semaphore(%49 : memref<!tpu.dma_semaphore, #tpu.memory_space<semaphore_mem>>) src(%arg5 : memref<256x256xbf16, #tpu.memory_space<any>>) dst(%47 : memref<256x256xbf16, #tpu.memory_space<vmem>>)
    %c1_i32_47 = arith.constant 1 : i32
    %c1_i32_48 = arith.constant 1 : i32
    %c1_i32_49 = arith.constant 1 : i32
    %c0_i32_50 = arith.constant 0 : i32
    %c0_i32_51 = arith.constant 0 : i32
    %50 = tpu.memref_slice %arg23[%c1_i32_47, %c0_i32_50, %c0_i32_51] : memref<2x256x256xbf16, #tpu.memory_space<vmem>> -> memref<1x128x128xbf16, #tpu.memory_space<vmem>>
    %51 = tpu.memref_squeeze %50 : memref<1x128x128xbf16, #tpu.memory_space<vmem>> -> memref<128x128xbf16, #tpu.memory_space<vmem>>
    %52 = tpu.memref_slice %arg24[%c1_i32_48, %c1_i32_49] : memref<2x2x!tpu.dma_semaphore, #tpu.memory_space<semaphore_mem>> -> memref<1x1x!tpu.dma_semaphore, #tpu.memory_space<semaphore_mem>>
    %53 = tpu.memref_squeeze %52 : memref<1x1x!tpu.dma_semaphore, #tpu.memory_space<semaphore_mem>> -> memref<!tpu.dma_semaphore, #tpu.memory_space<semaphore_mem>>
    tpu.wait_dma2 semaphore(%53 : memref<!tpu.dma_semaphore, #tpu.memory_space<semaphore_mem>>) src(%arg7 : memref<128x128xbf16, #tpu.memory_space<any>>) dst(%51 : memref<128x128xbf16, #tpu.memory_space<vmem>>)
    %c0_i32_52 = arith.constant 0 : i32
    %c0_i32_53 = arith.constant 0 : i32
    %c0_i32_54 = arith.constant 0 : i32
    %c0_i32_55 = arith.constant 0 : i32
    %c0_i32_56 = arith.constant 0 : i32
    %54 = tpu.memref_slice %arg22[%c0_i32_52, %c0_i32_55, %c0_i32_56] : memref<2x256x512xbf16, #tpu.memory_space<vmem>> -> memref<1x128x256xbf16, #tpu.memory_space<vmem>>
    %55 = tpu.memref_squeeze %54 : memref<1x128x256xbf16, #tpu.memory_space<vmem>> -> memref<128x256xbf16, #tpu.memory_space<vmem>>
    %56 = tpu.memref_slice %arg24[%c0_i32_53, %c0_i32_54] : memref<2x2x!tpu.dma_semaphore, #tpu.memory_space<semaphore_mem>> -> memref<1x1x!tpu.dma_semaphore, #tpu.memory_space<semaphore_mem>>
    %57 = tpu.memref_squeeze %56 : memref<1x1x!tpu.dma_semaphore, #tpu.memory_space<semaphore_mem>> -> memref<!tpu.dma_semaphore, #tpu.memory_space<semaphore_mem>>
    tpu.enqueue_dma source(%arg9 : memref<128x256xbf16, #tpu.memory_space<any>>) target(%55 : memref<128x256xbf16, #tpu.memory_space<vmem>>) target_semaphore(%57 : memref<!tpu.dma_semaphore, #tpu.memory_space<semaphore_mem>>)
    %c0_i32_57 = arith.constant 0 : i32
    %c1_i32_58 = arith.constant 1 : i32
    %c0_i32_59 = arith.constant 0 : i32
    %c0_i32_60 = arith.constant 0 : i32
    %c0_i32_61 = arith.constant 0 : i32
    %58 = tpu.memref_slice %arg23[%c0_i32_57, %c0_i32_60, %c0_i32_61] : memref<2x256x256xbf16, #tpu.memory_space<vmem>> -> memref<1x64x128xbf16, #tpu.memory_space<vmem>>
    %59 = tpu.memref_squeeze %58 : memref<1x64x128xbf16, #tpu.memory_space<vmem>> -> memref<64x128xbf16, #tpu.memory_space<vmem>>
    %60 = tpu.memref_slice %arg24[%c1_i32_58, %c0_i32_59] : memref<2x2x!tpu.dma_semaphore, #tpu.memory_space<semaphore_mem>> -> memref<1x1x!tpu.dma_semaphore, #tpu.memory_space<semaphore_mem>>
    %61 = tpu.memref_squeeze %60 : memref<1x1x!tpu.dma_semaphore, #tpu.memory_space<semaphore_mem>> -> memref<!tpu.dma_semaphore, #tpu.memory_space<semaphore_mem>>
    tpu.enqueue_dma source(%arg11 : memref<64x128xbf16, #tpu.memory_space<any>>) target(%59 : memref<64x128xbf16, #tpu.memory_space<vmem>>) target_semaphore(%61 : memref<!tpu.dma_semaphore, #tpu.memory_space<semaphore_mem>>)
    %c0_62 = arith.constant 0 : index
    %c0_63 = arith.constant 0 : index
    %62 = vector.load %arg6[%c0_62, %c0_63] : memref<1x256xf32, #tpu.memory_space<vmem>>, vector<1x256xf32>
    %c0_64 = arith.constant 0 : index
    %c0_65 = arith.constant 0 : index
    %63 = vector.load %arg8[%c0_64, %c0_65] : memref<1x128xf32, #tpu.memory_space<vmem>>, vector<1x128xf32>
    %c1 = arith.constant 1 : index
    %c0_66 = arith.constant 0 : index
    %c0_67 = arith.constant 0 : index
    %64 = vector.load %arg22[%c1, %c0_66, %c0_67] : memref<2x256x512xbf16, #tpu.memory_space<vmem>>, vector<1x256x256xbf16>
    %65 = vector.shape_cast %64 : vector<1x256x256xbf16> to vector<256x256xbf16>
    %c1_68 = arith.constant 1 : index
    %c0_69 = arith.constant 0 : index
    %c0_70 = arith.constant 0 : index
    %66 = vector.load %arg23[%c1_68, %c0_69, %c0_70] : memref<2x256x256xbf16, #tpu.memory_space<vmem>>, vector<1x128x128xbf16>
    %67 = vector.shape_cast %66 : vector<1x128x128xbf16> to vector<128x128xbf16>
    %68 = arith.truncf %45 : vector<8x256xf32> to vector<8x256xbf16>
    %cst_71 = arith.constant dense<0.000000e+00> : vector<8x256xf32>
    %69 = tpu.matmul %68, %65, %cst_71 {dimension_numbers = #tpu.dot_dimension_numbers<[1], [0], [0], [1], [0, 0, 1, 1], [], []>} : vector<8x256xbf16>, vector<256x256xbf16>, vector<8x256xf32> -> vector<8x256xf32>
    %70 = vector.broadcast %62 : vector<1x256xf32> to vector<8x256xf32>
    %71 = arith.addf %69, %70 : vector<8x256xf32>
    %72 = vector.extract_strided_slice %71 {offsets = [0, 0], sizes = [8, 128], strides = [1, 1]} : vector<8x256xf32> to vector<8x128xf32>
    %cst_72 = arith.constant 0.000000e+00 : f32
    %73 = vector.broadcast %cst_72 : f32 to vector<8x128xf32>
    %74 = arith.maximumf %72, %73 : vector<8x128xf32>
    %75 = vector.extract_strided_slice %71 {offsets = [0, 128], sizes = [8, 128], strides = [1, 1]} : vector<8x256xf32> to vector<8x128xf32>
    %76 = arith.truncf %74 : vector<8x128xf32> to vector<8x128xbf16>
    %cst_73 = arith.constant dense<0.000000e+00> : vector<8x128xf32>
    %77 = tpu.matmul %76, %67, %cst_73 {dimension_numbers = #tpu.dot_dimension_numbers<[1], [0], [0], [1], [0, 0, 1, 1], [], []>} : vector<8x128xbf16>, vector<128x128xbf16>, vector<8x128xf32> -> vector<8x128xf32>
    %78 = vector.broadcast %63 : vector<1x128xf32> to vector<8x128xf32>
    %79 = arith.addf %77, %78 : vector<8x128xf32>
    %80 = arith.addf %79, %75 : vector<8x128xf32>
    %cst_74 = arith.constant 0.000000e+00 : f32
    %81 = vector.broadcast %cst_74 : f32 to vector<8x128xf32>
    %82 = arith.maximumf %80, %81 : vector<8x128xf32>
    %c0_i32_75 = arith.constant 0 : i32
    %c0_i32_76 = arith.constant 0 : i32
    %c0_i32_77 = arith.constant 0 : i32
    %c0_i32_78 = arith.constant 0 : i32
    %c0_i32_79 = arith.constant 0 : i32
    %83 = tpu.memref_slice %arg22[%c0_i32_75, %c0_i32_78, %c0_i32_79] : memref<2x256x512xbf16, #tpu.memory_space<vmem>> -> memref<1x128x256xbf16, #tpu.memory_space<vmem>>
    %84 = tpu.memref_squeeze %83 : memref<1x128x256xbf16, #tpu.memory_space<vmem>> -> memref<128x256xbf16, #tpu.memory_space<vmem>>
    %85 = tpu.memref_slice %arg24[%c0_i32_76, %c0_i32_77] : memref<2x2x!tpu.dma_semaphore, #tpu.memory_space<semaphore_mem>> -> memref<1x1x!tpu.dma_semaphore, #tpu.memory_space<semaphore_mem>>
    %86 = tpu.memref_squeeze %85 : memref<1x1x!tpu.dma_semaphore, #tpu.memory_space<semaphore_mem>> -> memref<!tpu.dma_semaphore, #tpu.memory_space<semaphore_mem>>
    tpu.wait_dma2 semaphore(%86 : memref<!tpu.dma_semaphore, #tpu.memory_space<semaphore_mem>>) src(%arg9 : memref<128x256xbf16, #tpu.memory_space<any>>) dst(%84 : memref<128x256xbf16, #tpu.memory_space<vmem>>)
    %c0_i32_80 = arith.constant 0 : i32
    %c1_i32_81 = arith.constant 1 : i32
    %c0_i32_82 = arith.constant 0 : i32
    %c0_i32_83 = arith.constant 0 : i32
    %c0_i32_84 = arith.constant 0 : i32
    %87 = tpu.memref_slice %arg23[%c0_i32_80, %c0_i32_83, %c0_i32_84] : memref<2x256x256xbf16, #tpu.memory_space<vmem>> -> memref<1x64x128xbf16, #tpu.memory_space<vmem>>
    %88 = tpu.memref_squeeze %87 : memref<1x64x128xbf16, #tpu.memory_space<vmem>> -> memref<64x128xbf16, #tpu.memory_space<vmem>>
    %89 = tpu.memref_slice %arg24[%c1_i32_81, %c0_i32_82] : memref<2x2x!tpu.dma_semaphore, #tpu.memory_space<semaphore_mem>> -> memref<1x1x!tpu.dma_semaphore, #tpu.memory_space<semaphore_mem>>
    %90 = tpu.memref_squeeze %89 : memref<1x1x!tpu.dma_semaphore, #tpu.memory_space<semaphore_mem>> -> memref<!tpu.dma_semaphore, #tpu.memory_space<semaphore_mem>>
    tpu.wait_dma2 semaphore(%90 : memref<!tpu.dma_semaphore, #tpu.memory_space<semaphore_mem>>) src(%arg11 : memref<64x128xbf16, #tpu.memory_space<any>>) dst(%88 : memref<64x128xbf16, #tpu.memory_space<vmem>>)
    %c1_i32_85 = arith.constant 1 : i32
    %c0_i32_86 = arith.constant 0 : i32
    %c1_i32_87 = arith.constant 1 : i32
    %c0_i32_88 = arith.constant 0 : i32
    %c0_i32_89 = arith.constant 0 : i32
    %91 = tpu.memref_slice %arg22[%c1_i32_85, %c0_i32_88, %c0_i32_89] : memref<2x256x512xbf16, #tpu.memory_space<vmem>> -> memref<1x64x256xbf16, #tpu.memory_space<vmem>>
    %92 = tpu.memref_squeeze %91 : memref<1x64x256xbf16, #tpu.memory_space<vmem>> -> memref<64x256xbf16, #tpu.memory_space<vmem>>
    %93 = tpu.memref_slice %arg24[%c0_i32_86, %c1_i32_87] : memref<2x2x!tpu.dma_semaphore, #tpu.memory_space<semaphore_mem>> -> memref<1x1x!tpu.dma_semaphore, #tpu.memory_space<semaphore_mem>>
    %94 = tpu.memref_squeeze %93 : memref<1x1x!tpu.dma_semaphore, #tpu.memory_space<semaphore_mem>> -> memref<!tpu.dma_semaphore, #tpu.memory_space<semaphore_mem>>
    tpu.enqueue_dma source(%arg13 : memref<64x256xbf16, #tpu.memory_space<any>>) target(%92 : memref<64x256xbf16, #tpu.memory_space<vmem>>) target_semaphore(%94 : memref<!tpu.dma_semaphore, #tpu.memory_space<semaphore_mem>>)
    %c1_i32_90 = arith.constant 1 : i32
    %c1_i32_91 = arith.constant 1 : i32
    %c1_i32_92 = arith.constant 1 : i32
    %c0_i32_93 = arith.constant 0 : i32
    %c0_i32_94 = arith.constant 0 : i32
    %95 = tpu.memref_slice %arg23[%c1_i32_90, %c0_i32_93, %c0_i32_94] : memref<2x256x256xbf16, #tpu.memory_space<vmem>> -> memref<1x32x128xbf16, #tpu.memory_space<vmem>>
    %96 = tpu.memref_squeeze %95 : memref<1x32x128xbf16, #tpu.memory_space<vmem>> -> memref<32x128xbf16, #tpu.memory_space<vmem>>
    %97 = tpu.memref_slice %arg24[%c1_i32_91, %c1_i32_92] : memref<2x2x!tpu.dma_semaphore, #tpu.memory_space<semaphore_mem>> -> memref<1x1x!tpu.dma_semaphore, #tpu.memory_space<semaphore_mem>>
    %98 = tpu.memref_squeeze %97 : memref<1x1x!tpu.dma_semaphore, #tpu.memory_space<semaphore_mem>> -> memref<!tpu.dma_semaphore, #tpu.memory_space<semaphore_mem>>
    tpu.enqueue_dma source(%arg15 : memref<32x128xbf16, #tpu.memory_space<any>>) target(%96 : memref<32x128xbf16, #tpu.memory_space<vmem>>) target_semaphore(%98 : memref<!tpu.dma_semaphore, #tpu.memory_space<semaphore_mem>>)
    %c0_95 = arith.constant 0 : index
    %c0_96 = arith.constant 0 : index
    %99 = vector.load %arg10[%c0_95, %c0_96] : memref<1x256xf32, #tpu.memory_space<vmem>>, vector<1x256xf32>
    %c0_97 = arith.constant 0 : index
    %c0_98 = arith.constant 0 : index
    %100 = vector.load %arg12[%c0_97, %c0_98] : memref<1x128xf32, #tpu.memory_space<vmem>>, vector<1x128xf32>
    %c0_99 = arith.constant 0 : index
    %c0_100 = arith.constant 0 : index
    %c0_101 = arith.constant 0 : index
    %101 = vector.load %arg22[%c0_99, %c0_100, %c0_101] : memref<2x256x512xbf16, #tpu.memory_space<vmem>>, vector<1x128x256xbf16>
    %102 = vector.shape_cast %101 : vector<1x128x256xbf16> to vector<128x256xbf16>
    %c0_102 = arith.constant 0 : index
    %c0_103 = arith.constant 0 : index
    %c0_104 = arith.constant 0 : index
    %103 = vector.load %arg23[%c0_102, %c0_103, %c0_104] : memref<2x256x256xbf16, #tpu.memory_space<vmem>>, vector<1x64x128xbf16>
    %104 = vector.shape_cast %103 : vector<1x64x128xbf16> to vector<64x128xbf16>
    %105 = arith.truncf %82 : vector<8x128xf32> to vector<8x128xbf16>
    %cst_105 = arith.constant dense<0.000000e+00> : vector<8x256xf32>
    %106 = tpu.matmul %105, %102, %cst_105 {dimension_numbers = #tpu.dot_dimension_numbers<[1], [0], [0], [1], [0, 0, 1, 1], [], []>} : vector<8x128xbf16>, vector<128x256xbf16>, vector<8x256xf32> -> vector<8x256xf32>
    %107 = vector.broadcast %99 : vector<1x256xf32> to vector<8x256xf32>
    %108 = arith.addf %106, %107 : vector<8x256xf32>
    %109 = vector.extract_strided_slice %108 {offsets = [0, 0], sizes = [8, 128], strides = [1, 1]} : vector<8x256xf32> to vector<8x128xf32>
    %cst_106 = arith.constant 0.000000e+00 : f32
    %110 = vector.broadcast %cst_106 : f32 to vector<8x128xf32>
    %111 = arith.maximumf %109, %110 : vector<8x128xf32>
    %112 = vector.extract_strided_slice %108 {offsets = [0, 128], sizes = [8, 128], strides = [1, 1]} : vector<8x256xf32> to vector<8x128xf32>
    %113 = vector.extract_strided_slice %111 {offsets = [0, 0], sizes = [8, 64], strides = [1, 1]} : vector<8x128xf32> to vector<8x64xf32>
    %114 = arith.truncf %113 : vector<8x64xf32> to vector<8x64xbf16>
    %cst_107 = arith.constant dense<0.000000e+00> : vector<8x128xf32>
    %115 = tpu.matmul %114, %104, %cst_107 {dimension_numbers = #tpu.dot_dimension_numbers<[1], [0], [0], [1], [0, 0, 1, 1], [], []>} : vector<8x64xbf16>, vector<64x128xbf16>, vector<8x128xf32> -> vector<8x128xf32>
    %116 = vector.broadcast %100 : vector<1x128xf32> to vector<8x128xf32>
    %117 = arith.addf %115, %116 : vector<8x128xf32>
    %118 = arith.addf %117, %112 : vector<8x128xf32>
    %cst_108 = arith.constant 0.000000e+00 : f32
    %119 = vector.broadcast %cst_108 : f32 to vector<8x128xf32>
    %120 = arith.maximumf %118, %119 : vector<8x128xf32>
    %c1_i32_109 = arith.constant 1 : i32
    %c0_i32_110 = arith.constant 0 : i32
    %c1_i32_111 = arith.constant 1 : i32
    %c0_i32_112 = arith.constant 0 : i32
    %c0_i32_113 = arith.constant 0 : i32
    %121 = tpu.memref_slice %arg22[%c1_i32_109, %c0_i32_112, %c0_i32_113] : memref<2x256x512xbf16, #tpu.memory_space<vmem>> -> memref<1x64x256xbf16, #tpu.memory_space<vmem>>
    %122 = tpu.memref_squeeze %121 : memref<1x64x256xbf16, #tpu.memory_space<vmem>> -> memref<64x256xbf16, #tpu.memory_space<vmem>>
    %123 = tpu.memref_slice %arg24[%c0_i32_110, %c1_i32_111] : memref<2x2x!tpu.dma_semaphore, #tpu.memory_space<semaphore_mem>> -> memref<1x1x!tpu.dma_semaphore, #tpu.memory_space<semaphore_mem>>
    %124 = tpu.memref_squeeze %123 : memref<1x1x!tpu.dma_semaphore, #tpu.memory_space<semaphore_mem>> -> memref<!tpu.dma_semaphore, #tpu.memory_space<semaphore_mem>>
    tpu.wait_dma2 semaphore(%124 : memref<!tpu.dma_semaphore, #tpu.memory_space<semaphore_mem>>) src(%arg13 : memref<64x256xbf16, #tpu.memory_space<any>>) dst(%122 : memref<64x256xbf16, #tpu.memory_space<vmem>>)
    %c1_i32_114 = arith.constant 1 : i32
    %c1_i32_115 = arith.constant 1 : i32
    %c1_i32_116 = arith.constant 1 : i32
    %c0_i32_117 = arith.constant 0 : i32
    %c0_i32_118 = arith.constant 0 : i32
    %125 = tpu.memref_slice %arg23[%c1_i32_114, %c0_i32_117, %c0_i32_118] : memref<2x256x256xbf16, #tpu.memory_space<vmem>> -> memref<1x32x128xbf16, #tpu.memory_space<vmem>>
    %126 = tpu.memref_squeeze %125 : memref<1x32x128xbf16, #tpu.memory_space<vmem>> -> memref<32x128xbf16, #tpu.memory_space<vmem>>
    %127 = tpu.memref_slice %arg24[%c1_i32_115, %c1_i32_116] : memref<2x2x!tpu.dma_semaphore, #tpu.memory_space<semaphore_mem>> -> memref<1x1x!tpu.dma_semaphore, #tpu.memory_space<semaphore_mem>>
    %128 = tpu.memref_squeeze %127 : memref<1x1x!tpu.dma_semaphore, #tpu.memory_space<semaphore_mem>> -> memref<!tpu.dma_semaphore, #tpu.memory_space<semaphore_mem>>
    tpu.wait_dma2 semaphore(%128 : memref<!tpu.dma_semaphore, #tpu.memory_space<semaphore_mem>>) src(%arg15 : memref<32x128xbf16, #tpu.memory_space<any>>) dst(%126 : memref<32x128xbf16, #tpu.memory_space<vmem>>)
    %c0_i32_119 = arith.constant 0 : i32
    %c0_i32_120 = arith.constant 0 : i32
    %c0_i32_121 = arith.constant 0 : i32
    %c0_i32_122 = arith.constant 0 : i32
    %c0_i32_123 = arith.constant 0 : i32
    %129 = tpu.memref_slice %arg22[%c0_i32_119, %c0_i32_122, %c0_i32_123] : memref<2x256x512xbf16, #tpu.memory_space<vmem>> -> memref<1x32x256xbf16, #tpu.memory_space<vmem>>
    %130 = tpu.memref_squeeze %129 : memref<1x32x256xbf16, #tpu.memory_space<vmem>> -> memref<32x256xbf16, #tpu.memory_space<vmem>>
    %131 = tpu.memref_slice %arg24[%c0_i32_120, %c0_i32_121] : memref<2x2x!tpu.dma_semaphore, #tpu.memory_space<semaphore_mem>> -> memref<1x1x!tpu.dma_semaphore, #tpu.memory_space<semaphore_mem>>
    %132 = tpu.memref_squeeze %131 : memref<1x1x!tpu.dma_semaphore, #tpu.memory_space<semaphore_mem>> -> memref<!tpu.dma_semaphore, #tpu.memory_space<semaphore_mem>>
    tpu.enqueue_dma source(%arg17 : memref<32x256xbf16, #tpu.memory_space<any>>) target(%130 : memref<32x256xbf16, #tpu.memory_space<vmem>>) target_semaphore(%132 : memref<!tpu.dma_semaphore, #tpu.memory_space<semaphore_mem>>)
    %c0_i32_124 = arith.constant 0 : i32
    %c1_i32_125 = arith.constant 1 : i32
    %c0_i32_126 = arith.constant 0 : i32
    %c0_i32_127 = arith.constant 0 : i32
    %c0_i32_128 = arith.constant 0 : i32
    %133 = tpu.memref_slice %arg23[%c0_i32_124, %c0_i32_127, %c0_i32_128] : memref<2x256x256xbf16, #tpu.memory_space<vmem>> -> memref<1x16x128xbf16, #tpu.memory_space<vmem>>
    %134 = tpu.memref_squeeze %133 : memref<1x16x128xbf16, #tpu.memory_space<vmem>> -> memref<16x128xbf16, #tpu.memory_space<vmem>>
    %135 = tpu.memref_slice %arg24[%c1_i32_125, %c0_i32_126] : memref<2x2x!tpu.dma_semaphore, #tpu.memory_space<semaphore_mem>> -> memref<1x1x!tpu.dma_semaphore, #tpu.memory_space<semaphore_mem>>
    %136 = tpu.memref_squeeze %135 : memref<1x1x!tpu.dma_semaphore, #tpu.memory_space<semaphore_mem>> -> memref<!tpu.dma_semaphore, #tpu.memory_space<semaphore_mem>>
    tpu.enqueue_dma source(%arg19 : memref<16x128xbf16, #tpu.memory_space<any>>) target(%134 : memref<16x128xbf16, #tpu.memory_space<vmem>>) target_semaphore(%136 : memref<!tpu.dma_semaphore, #tpu.memory_space<semaphore_mem>>)
    %c0_129 = arith.constant 0 : index
    %c0_130 = arith.constant 0 : index
    %137 = vector.load %arg14[%c0_129, %c0_130] : memref<1x256xf32, #tpu.memory_space<vmem>>, vector<1x256xf32>
    %c0_131 = arith.constant 0 : index
    %c0_132 = arith.constant 0 : index
    %138 = vector.load %arg16[%c0_131, %c0_132] : memref<1x128xf32, #tpu.memory_space<vmem>>, vector<1x128xf32>
    %c1_133 = arith.constant 1 : index
    %c0_134 = arith.constant 0 : index
    %c0_135 = arith.constant 0 : index
    %139 = vector.load %arg22[%c1_133, %c0_134, %c0_135] : memref<2x256x512xbf16, #tpu.memory_space<vmem>>, vector<1x64x256xbf16>
    %140 = vector.shape_cast %139 : vector<1x64x256xbf16> to vector<64x256xbf16>
    %c1_136 = arith.constant 1 : index
    %c0_137 = arith.constant 0 : index
    %c0_138 = arith.constant 0 : index
    %141 = vector.load %arg23[%c1_136, %c0_137, %c0_138] : memref<2x256x256xbf16, #tpu.memory_space<vmem>>, vector<1x32x128xbf16>
    %142 = vector.shape_cast %141 : vector<1x32x128xbf16> to vector<32x128xbf16>
    %143 = vector.extract_strided_slice %120 {offsets = [0, 0], sizes = [8, 64], strides = [1, 1]} : vector<8x128xf32> to vector<8x64xf32>
    %144 = arith.truncf %143 : vector<8x64xf32> to vector<8x64xbf16>
    %cst_139 = arith.constant dense<0.000000e+00> : vector<8x256xf32>
    %145 = tpu.matmul %144, %140, %cst_139 {dimension_numbers = #tpu.dot_dimension_numbers<[1], [0], [0], [1], [0, 0, 1, 1], [], []>} : vector<8x64xbf16>, vector<64x256xbf16>, vector<8x256xf32> -> vector<8x256xf32>
    %146 = vector.broadcast %137 : vector<1x256xf32> to vector<8x256xf32>
    %147 = arith.addf %145, %146 : vector<8x256xf32>
    %148 = vector.extract_strided_slice %147 {offsets = [0, 0], sizes = [8, 128], strides = [1, 1]} : vector<8x256xf32> to vector<8x128xf32>
    %cst_140 = arith.constant 0.000000e+00 : f32
    %149 = vector.broadcast %cst_140 : f32 to vector<8x128xf32>
    %150 = arith.maximumf %148, %149 : vector<8x128xf32>
    %151 = vector.extract_strided_slice %147 {offsets = [0, 128], sizes = [8, 128], strides = [1, 1]} : vector<8x256xf32> to vector<8x128xf32>
    %152 = vector.extract_strided_slice %150 {offsets = [0, 0], sizes = [8, 32], strides = [1, 1]} : vector<8x128xf32> to vector<8x32xf32>
    %153 = arith.truncf %152 : vector<8x32xf32> to vector<8x32xbf16>
    %cst_141 = arith.constant dense<0.000000e+00> : vector<8x128xf32>
    %154 = tpu.matmul %153, %142, %cst_141 {dimension_numbers = #tpu.dot_dimension_numbers<[1], [0], [0], [1], [0, 0, 1, 1], [], []>} : vector<8x32xbf16>, vector<32x128xbf16>, vector<8x128xf32> -> vector<8x128xf32>
    %155 = vector.broadcast %138 : vector<1x128xf32> to vector<8x128xf32>
    %156 = arith.addf %154, %155 : vector<8x128xf32>
    %157 = arith.addf %156, %151 : vector<8x128xf32>
    %cst_142 = arith.constant 0.000000e+00 : f32
    %158 = vector.broadcast %cst_142 : f32 to vector<8x128xf32>
    %159 = arith.maximumf %157, %158 : vector<8x128xf32>
    %c0_i32_143 = arith.constant 0 : i32
    %c0_i32_144 = arith.constant 0 : i32
    %c0_i32_145 = arith.constant 0 : i32
    %c0_i32_146 = arith.constant 0 : i32
    %c0_i32_147 = arith.constant 0 : i32
    %160 = tpu.memref_slice %arg22[%c0_i32_143, %c0_i32_146, %c0_i32_147] : memref<2x256x512xbf16, #tpu.memory_space<vmem>> -> memref<1x32x256xbf16, #tpu.memory_space<vmem>>
    %161 = tpu.memref_squeeze %160 : memref<1x32x256xbf16, #tpu.memory_space<vmem>> -> memref<32x256xbf16, #tpu.memory_space<vmem>>
    %162 = tpu.memref_slice %arg24[%c0_i32_144, %c0_i32_145] : memref<2x2x!tpu.dma_semaphore, #tpu.memory_space<semaphore_mem>> -> memref<1x1x!tpu.dma_semaphore, #tpu.memory_space<semaphore_mem>>
    %163 = tpu.memref_squeeze %162 : memref<1x1x!tpu.dma_semaphore, #tpu.memory_space<semaphore_mem>> -> memref<!tpu.dma_semaphore, #tpu.memory_space<semaphore_mem>>
    tpu.wait_dma2 semaphore(%163 : memref<!tpu.dma_semaphore, #tpu.memory_space<semaphore_mem>>) src(%arg17 : memref<32x256xbf16, #tpu.memory_space<any>>) dst(%161 : memref<32x256xbf16, #tpu.memory_space<vmem>>)
    %c0_i32_148 = arith.constant 0 : i32
    %c1_i32_149 = arith.constant 1 : i32
    %c0_i32_150 = arith.constant 0 : i32
    %c0_i32_151 = arith.constant 0 : i32
    %c0_i32_152 = arith.constant 0 : i32
    %164 = tpu.memref_slice %arg23[%c0_i32_148, %c0_i32_151, %c0_i32_152] : memref<2x256x256xbf16, #tpu.memory_space<vmem>> -> memref<1x16x128xbf16, #tpu.memory_space<vmem>>
    %165 = tpu.memref_squeeze %164 : memref<1x16x128xbf16, #tpu.memory_space<vmem>> -> memref<16x128xbf16, #tpu.memory_space<vmem>>
    %166 = tpu.memref_slice %arg24[%c1_i32_149, %c0_i32_150] : memref<2x2x!tpu.dma_semaphore, #tpu.memory_space<semaphore_mem>> -> memref<1x1x!tpu.dma_semaphore, #tpu.memory_space<semaphore_mem>>
    %167 = tpu.memref_squeeze %166 : memref<1x1x!tpu.dma_semaphore, #tpu.memory_space<semaphore_mem>> -> memref<!tpu.dma_semaphore, #tpu.memory_space<semaphore_mem>>
    tpu.wait_dma2 semaphore(%167 : memref<!tpu.dma_semaphore, #tpu.memory_space<semaphore_mem>>) src(%arg19 : memref<16x128xbf16, #tpu.memory_space<any>>) dst(%165 : memref<16x128xbf16, #tpu.memory_space<vmem>>)
    %c0_153 = arith.constant 0 : index
    %c0_154 = arith.constant 0 : index
    %168 = vector.load %arg18[%c0_153, %c0_154] : memref<1x256xf32, #tpu.memory_space<vmem>>, vector<1x256xf32>
    %c0_155 = arith.constant 0 : index
    %c0_156 = arith.constant 0 : index
    %169 = vector.load %arg20[%c0_155, %c0_156] : memref<1x128xf32, #tpu.memory_space<vmem>>, vector<1x128xf32>
    %c0_157 = arith.constant 0 : index
    %c0_158 = arith.constant 0 : index
    %c0_159 = arith.constant 0 : index
    %170 = vector.load %arg22[%c0_157, %c0_158, %c0_159] : memref<2x256x512xbf16, #tpu.memory_space<vmem>>, vector<1x32x256xbf16>
    %171 = vector.shape_cast %170 : vector<1x32x256xbf16> to vector<32x256xbf16>
    %c0_160 = arith.constant 0 : index
    %c0_161 = arith.constant 0 : index
    %c0_162 = arith.constant 0 : index
    %172 = vector.load %arg23[%c0_160, %c0_161, %c0_162] : memref<2x256x256xbf16, #tpu.memory_space<vmem>>, vector<1x16x128xbf16>
    %173 = vector.shape_cast %172 : vector<1x16x128xbf16> to vector<16x128xbf16>
    %174 = vector.extract_strided_slice %159 {offsets = [0, 0], sizes = [8, 32], strides = [1, 1]} : vector<8x128xf32> to vector<8x32xf32>
    %175 = arith.truncf %174 : vector<8x32xf32> to vector<8x32xbf16>
    %cst_163 = arith.constant dense<0.000000e+00> : vector<8x256xf32>
    %176 = tpu.matmul %175, %171, %cst_163 {dimension_numbers = #tpu.dot_dimension_numbers<[1], [0], [0], [1], [0, 0, 1, 1], [], []>} : vector<8x32xbf16>, vector<32x256xbf16>, vector<8x256xf32> -> vector<8x256xf32>
    %177 = vector.broadcast %168 : vector<1x256xf32> to vector<8x256xf32>
    %178 = arith.addf %176, %177 : vector<8x256xf32>
    %179 = vector.extract_strided_slice %178 {offsets = [0, 0], sizes = [8, 128], strides = [1, 1]} : vector<8x256xf32> to vector<8x128xf32>
    %cst_164 = arith.constant 0.000000e+00 : f32
    %180 = vector.broadcast %cst_164 : f32 to vector<8x128xf32>
    %181 = arith.maximumf %179, %180 : vector<8x128xf32>
    %182 = vector.extract_strided_slice %178 {offsets = [0, 128], sizes = [8, 128], strides = [1, 1]} : vector<8x256xf32> to vector<8x128xf32>
    %183 = vector.extract_strided_slice %181 {offsets = [0, 0], sizes = [8, 16], strides = [1, 1]} : vector<8x128xf32> to vector<8x16xf32>
    %184 = arith.truncf %183 : vector<8x16xf32> to vector<8x16xbf16>
    %cst_165 = arith.constant dense<0.000000e+00> : vector<8x128xf32>
    %185 = tpu.matmul %184, %173, %cst_165 {dimension_numbers = #tpu.dot_dimension_numbers<[1], [0], [0], [1], [0, 0, 1, 1], [], []>} : vector<8x16xbf16>, vector<16x128xbf16>, vector<8x128xf32> -> vector<8x128xf32>
    %186 = vector.broadcast %169 : vector<1x128xf32> to vector<8x128xf32>
    %187 = arith.addf %185, %186 : vector<8x128xf32>
    %188 = arith.addf %187, %182 : vector<8x128xf32>
    %189 = vector.extract_strided_slice %188 {offsets = [0, 0], sizes = [8, 10], strides = [1, 1]} : vector<8x128xf32> to vector<8x10xf32>
    %c0_166 = arith.constant 0 : index
    %c0_167 = arith.constant 0 : index
    %190 = vector.load %arg21[%c0_166, %c0_167] : memref<8x10xf32, #tpu.memory_space<vmem>>, vector<8x10xf32>
    tpu.vector_store %arg21[%c0_166, %c0_167], %189 {strides = array<i32>} : memref<8x10xf32, #tpu.memory_space<vmem>>, vector<8x10xf32>,
    return
  }
}

</mosaic_0001>

<bundles_post_ra>
// kernel: simple_nn_forward.1
= control target key start
LH: loop header
LB: loop body
LE: loop exit
PB: predicated region body
PF: predicated region fallthrough
CT: control target
= control target key end

     0   :  { %s2283_s0 = inlined_call_operand.hbm [shape: f32[8,32], index: 0, kind: input, shape index: {}]   ;;  %s2284_s1 = inlined_call_operand.hbm [shape: bf16[32,512], index: 1, kind: input, shape index: {}]   ;;  %s2285_s2 = inlined_call_operand.hbm [shape: f32[1,512], index: 2, kind: input, shape index: {}]   ;;  %s2286_s3 = inlined_call_operand.hbm [shape: bf16[256,256], index: 3, kind: input, shape index: {}]   ;;  %s2287_s4 = inlined_call_operand.hbm [shape: f32[1,256], index: 4, kind: input, shape index: {}]   ;;  %s2288_s5 = inlined_call_operand.hbm [shape: bf16[256,256], index: 5, kind: input, shape index: {}]   ;;  %s2289_s6 = inlined_call_operand.hbm [shape: f32[1,256], index: 6, kind: input, shape index: {}]   ;;  %s2290_s7 = inlined_call_operand.hbm [shape: bf16[128,128], index: 7, kind: input, shape index: {}]   ;;  %s2291_s8 = inlined_call_operand.hbm [shape: f32[1,128], index: 8, kind: input, shape index: {}]   ;;  %s2292_s9 = inlined_call_operand.hbm [shape: bf16[128,256], index: 9, kind: input, shape index: {}]   ;;  %s2293_s10 = inlined_call_operand.hbm [shape: f32[1,256], index: 10, kind: input, shape index: {}]   ;;  %s2294_s11 = inlined_call_operand.vmem [shape: bf16[64,128], index: 11, kind: input, shape index: {}]   ;;  %s2295_s12 = inlined_call_operand.hbm [shape: f32[1,128], index: 12, kind: input, shape index: {}]   ;;  %s2296_s13 = inlined_call_operand.hbm [shape: bf16[64,256], index: 13, kind: input, shape index: {}]   ;;  %s2297_s14 = inlined_call_operand.hbm [shape: f32[1,256], index: 14, kind: input, shape index: {}]   ;;  %s2298_s15 = inlined_call_operand.hbm [shape: bf16[32,128], index: 15, kind: input, shape index: {}]   ;;  %s2299_s16 = inlined_call_operand.hbm [shape: f32[1,128], index: 16, kind: input, shape index: {}]   ;;  %s2300_s17 = inlined_call_operand.vmem [shape: bf16[32,256], index: 17, kind: input, shape index: {}]   ;;  %s2301_s18 = inlined_call_operand.vmem [shape: f32[1,256], index: 18, kind: input, shape index: {}]   ;;  %s2302_s19 = inlined_call_operand.hbm [shape: bf16[16,128], index: 19, kind: input, shape index: {}]   ;;  %s2303_s20 = inlined_call_operand.vmem [shape: f32[1,128], index: 20, kind: input, shape index: {}]   ;;  %s2304_s21 = inlined_call_operand.hbm [shape: f32[8,10], index: 21, kind: output, shape index: {}]  }
   0x1   :  { %2318 = sst [smem:[#allocation55_spill]] %s2283_s0 }
   0x2   :  { %2319 = sst [smem:[#allocation56_spill]] %s2284_s1 }
   0x3   :  { %2320 = sst [smem:[#allocation57_spill]] %s2285_s2 }
   0x4   :  { %2321 = sst [smem:[#allocation58_spill]] %s2286_s3 }
   0x5   :  { %2322 = sst [smem:[#allocation59_spill]] %s2287_s4 }
   0x6   :  { %2323 = sst [smem:[#allocation60_spill]] %s2288_s5 }
   0x7   :  { %26 = vsyncpa [#allocation6], 0 }
   0x8   :  { %27 = vsyncpa [#allocation9], 0 }
   0x9   :  { %28 = vsyncpa [#allocation12], 0 }
   0xa   :  { %29 = vsyncpa [#allocation15], 0 }
   0xb   :  { %30 = vsyncpa [#allocation18], 0 }
   0xc   :  { %31 = vsyncpa [#allocation7], 0  ;;  %s1760_s2 = smov [#allocation8]   ;;  %s1761_s26 = smov [#allocation11]  }
   0xd   :  { %s48_s25 = sshll.u32 %s1760_s2, 4  ;;  %s68_s27 = sshll.u32 %s1761_s26, 4  ;;  %s49_s25 = int_to_ptr.vmem [resolvable:$true] %s48_s25  ;;  %s69_s27 = int_to_ptr.vmem [resolvable:$true] %s68_s27 }
   0xe   :  { %s2324_s29 = sld [smem:[#allocation57_spill]] }
  0x14   :  { %s1442_s0 = scalar_lea.hbm %s2324_s29, 64 }
  0x15   :  { %p1443_p0 = scmp.ne.s32.totalorder %s2324_s29, %s1442_s0  ;;  %p1446_p1 = scmp.lt.u32.totalorder %s1442_s0, %s2324_s29 }
  0x17   :  { %p1448_p2 = pnand %p1446_p1, %p1443_p0 }
  0x19   :  { %1451 = shalt.err (!%p1448_p2)
}
  0x1a   :  { %s1452_s23 = scalar_lea.vmem %s49_s25, 64  ;;  %p1457_p4 = scmp.lt.s32.totalorder %s49_s25, %s49_s25 }
  0x1b   :  { %p1453_p3 = scmp.ne.s32.totalorder %s49_s25, %s1452_s23  ;;  %p1458_p5 = scmp.lt.s32.totalorder %s1452_s23, %s1452_s23 }
  0x1d   :  { %p1459_p6 = por %p1458_p5, %p1457_p4 }
  0x1f   :  { %p1460_p7 = pnand %p1459_p6, %p1453_p3 }
  0x21   :  { %1463 = shalt.err (!%p1460_p7)
}
  0x22   :  { %51 = dma.hbm_to_vmem [thread:$0]  %s2324_s29, 64, %s49_s25, [#allocation9]  }
  0x23   :  { %s1464_s3 = scalar_lea.hbm %s2289_s6, 32 }
  0x24   :  { %p1465_p8 = scmp.ne.s32.totalorder %s2289_s6, %s1464_s3  ;;  %p1468_p9 = scmp.lt.u32.totalorder %s1464_s3, %s2289_s6 }
  0x26   :  { %p1470_p10 = pnand %p1468_p9, %p1465_p8 }
  0x28   :  { %1473 = shalt.err (!%p1470_p10)
}
  0x29   :  { %s1474_s5 = scalar_lea.vmem %s69_s27, 32  ;;  %p1479_p12 = scmp.lt.s32.totalorder %s69_s27, %s69_s27 }
  0x2a   :  { %p1475_p11 = scmp.ne.s32.totalorder %s69_s27, %s1474_s5  ;;  %p1480_p13 = scmp.lt.s32.totalorder %s1474_s5, %s1474_s5 }
  0x2c   :  { %p1481_p0 = por %p1480_p13, %p1479_p12 }
  0x2e   :  { %p1482_p1 = pnand %p1481_p0, %p1475_p11 }
  0x30   :  { %1485 = shalt.err (!%p1482_p1)
}
  0x31   :  { %71 = dma.hbm_to_vmem [thread:$0]  %s2289_s6, 32, %s69_s27, [#allocation12]  }
  0x32   :  { %s1762_s22 = smov [#allocation14]   ;;  %s1763_s1 = smov [#allocation17]  }
  0x33   :  { %s88_s23 = sshll.u32 %s1762_s22, 4  ;;  %s108_s24 = sshll.u32 %s1763_s1, 4  ;;  %s89_s23 = int_to_ptr.vmem [resolvable:$true] %s88_s23  ;;  %s109_s24 = int_to_ptr.vmem [resolvable:$true] %s108_s24 }
  0x34   :  { %s1486_s3 = scalar_lea.hbm %s2293_s10, 32 }
  0x35   :  { %p1487_p2 = scmp.ne.s32.totalorder %s2293_s10, %s1486_s3  ;;  %p1490_p3 = scmp.lt.u32.totalorder %s1486_s3, %s2293_s10 }
  0x37   :  { %p1492_p4 = pnand %p1490_p3, %p1487_p2 }
  0x39   :  { %1495 = shalt.err (!%p1492_p4)
}
  0x3a   :  { %s1496_s6 = scalar_lea.vmem %s89_s23, 32  ;;  %p1501_p6 = scmp.lt.s32.totalorder %s89_s23, %s89_s23 }
  0x3b   :  { %p1497_p5 = scmp.ne.s32.totalorder %s89_s23, %s1496_s6  ;;  %p1502_p7 = scmp.lt.s32.totalorder %s1496_s6, %s1496_s6 }
  0x3d   :  { %p1503_p8 = por %p1502_p7, %p1501_p6 }
  0x3f   :  { %p1504_p9 = pnand %p1503_p8, %p1497_p5 }
  0x41   :  { %1507 = shalt.err (!%p1504_p9)
}
  0x42   :  { %91 = dma.hbm_to_vmem [thread:$0]  %s2293_s10, 32, %s89_s23, [#allocation15]  }
  0x43   :  { %s1508_s22 = scalar_lea.hbm %s2297_s14, 32 }
  0x44   :  { %p1509_p10 = scmp.ne.s32.totalorder %s2297_s14, %s1508_s22  ;;  %p1512_p11 = scmp.lt.u32.totalorder %s1508_s22, %s2297_s14 }
  0x46   :  { %p1514_p12 = pnand %p1512_p11, %p1509_p10 }
  0x48   :  { %1517 = shalt.err (!%p1514_p12)
}
  0x49   :  { %s1518_s28 = scalar_lea.vmem %s109_s24, 32  ;;  %p1523_p0 = scmp.lt.s32.totalorder %s109_s24, %s109_s24 }
  0x4a   :  { %p1519_p13 = scmp.ne.s32.totalorder %s109_s24, %s1518_s28  ;;  %p1524_p1 = scmp.lt.s32.totalorder %s1518_s28, %s1518_s28 }
  0x4c   :  { %p1525_p2 = por %p1524_p1, %p1523_p0 }
  0x4e   :  { %p1526_p3 = pnand %p1525_p2, %p1519_p13 }
  0x50   :  { %1529 = shalt.err (!%p1526_p3)
}
  0x51   :  { %111 = dma.hbm_to_vmem [thread:$0]  %s2297_s14, 32, %s109_s24, [#allocation18]  }
  0x52   :  { %s1764_s4 = smov [#allocation5]   ;;  %s1765_s30 = smov [#allocation10]  }
  0x53   :  { %s38_s0 = sshll.u32 %s1764_s4, 4  ;;  %s58_s6 = sshll.u32 %s1765_s30, 4  ;;  %s39_s0 = int_to_ptr.vmem [resolvable:$true] %s38_s0  ;;  %s59_s6 = int_to_ptr.vmem [resolvable:$true] %s58_s6 }
  0x54   :  { %s2325_s25 = sld [smem:[#allocation55_spill]] }
  0x5a   :  { %s1530_s29 = scalar_lea.hbm %s2325_s25, 128 }
  0x5b   :  { %p1531_p4 = scmp.ne.s32.totalorder %s2325_s25, %s1530_s29  ;;  %p1534_p5 = scmp.lt.u32.totalorder %s1530_s29, %s2325_s25 }
  0x5d   :  { %p1536_p6 = pnand %p1534_p5, %p1531_p4 }
  0x5f   :  { %1539 = shalt.err (!%p1536_p6)
}
  0x60   :  { %s1540_s14 = scalar_lea.vmem %s39_s0, 128  ;;  %p1545_p8 = scmp.lt.s32.totalorder %s39_s0, %s39_s0 }
  0x61   :  { %p1541_p7 = scmp.ne.s32.totalorder %s39_s0, %s1540_s14  ;;  %p1546_p9 = scmp.lt.s32.totalorder %s1540_s14, %s1540_s14 }
  0x63   :  { %p1547_p10 = por %p1546_p9, %p1545_p8 }
  0x65   :  { %p1548_p11 = pnand %p1547_p10, %p1541_p7 }
  0x67   :  { %1551 = shalt.err (!%p1548_p11)
}
  0x68   :  { %41 = dma.hbm_to_vmem [thread:$0]  %s2325_s25, 128, %s39_s0, [#allocation6]  }
  0x69   :  { %s2326_s23 = sld [smem:[#allocation59_spill]] }
  0x6f   :  { %s1552_s4 = scalar_lea.hbm %s2326_s23, 32 }
  0x70   :  { %p1553_p12 = scmp.ne.s32.totalorder %s2326_s23, %s1552_s4  ;;  %p1556_p13 = scmp.lt.u32.totalorder %s1552_s4, %s2326_s23 }
  0x72   :  { %p1558_p0 = pnand %p1556_p13, %p1553_p12 }
  0x74   :  { %1561 = shalt.err (!%p1558_p0)
}
  0x75   :  { %s1562_s22 = scalar_lea.vmem %s59_s6, 32  ;;  %p1567_p2 = scmp.lt.s32.totalorder %s59_s6, %s59_s6 }
  0x76   :  { %p1563_p1 = scmp.ne.s32.totalorder %s59_s6, %s1562_s22  ;;  %p1568_p3 = scmp.lt.s32.totalorder %s1562_s22, %s1562_s22 }
  0x78   :  { %p1569_p4 = por %p1568_p3, %p1567_p2 }
  0x7a   :  { %p1570_p5 = pnand %p1569_p4, %p1563_p1 }
  0x7c   :  { %1573 = shalt.err (!%p1570_p5)
}
  0x7d   :  { %61 = dma.hbm_to_vmem [thread:$0]  %s2326_s23, 32, %s59_s6, [#allocation9]  }
  0x7e   :  { %s1766_s1 = smov [#allocation13]   ;;  %s1767_s26 = smov [#allocation16]  }
  0x7f   :  { %s78_s2 = sshll.u32 %s1766_s1, 4  ;;  %s98_s14 = sshll.u32 %s1767_s26, 4  ;;  %s79_s2 = int_to_ptr.vmem [resolvable:$true] %s78_s2  ;;  %s99_s14 = int_to_ptr.vmem [resolvable:$true] %s98_s14 }
  0x80   :  { %s1574_s28 = scalar_lea.hbm %s2291_s8, 16 }
  0x81   :  { %p1575_p6 = scmp.ne.s32.totalorder %s2291_s8, %s1574_s28  ;;  %p1578_p7 = scmp.lt.u32.totalorder %s1574_s28, %s2291_s8 }
  0x83   :  { %p1580_p8 = pnand %p1578_p7, %p1575_p6 }
  0x85   :  { %1583 = shalt.err (!%p1580_p8)
}
  0x86   :  { %s1584_s6 = scalar_lea.vmem %s79_s2, 16  ;;  %s1588_s23 = scalar_lea.vmem %s79_s2, 32 }
  0x87   :  { %p1585_p9 = scmp.ne.s32.totalorder %s79_s2, %s1584_s6  ;;  %p1589_p10 = scmp.lt.s32.totalorder %s79_s2, %s79_s2 }
  0x88   :  { %p1590_p11 = scmp.lt.s32.totalorder %s1588_s23, %s1584_s6 }
  0x8a   :  { %p1591_p12 = por %p1590_p11, %p1589_p10 }
  0x8c   :  { %p1592_p13 = pnand %p1591_p12, %p1585_p9 }
  0x8e   :  { %1595 = shalt.err (!%p1592_p13)
}
  0x8f   :  { %81 = dma.hbm_to_vmem [thread:$0]  %s2291_s8, 16, %s79_s2, [#allocation12]  }
  0x90   :  { %s1596_s25 = scalar_lea.hbm %s2295_s12, 16 }
  0x91   :  { %p1597_p0 = scmp.ne.s32.totalorder %s2295_s12, %s1596_s25  ;;  %p1600_p1 = scmp.lt.u32.totalorder %s1596_s25, %s2295_s12 }
  0x93   :  { %p1602_p2 = pnand %p1600_p1, %p1597_p0 }
  0x95   :  { %1605 = shalt.err (!%p1602_p2)
}
  0x96   :  { %s1606_s28 = scalar_lea.vmem %s99_s14, 16  ;;  %s1610_s10 = scalar_lea.vmem %s99_s14, 32 }
  0x97   :  { %p1607_p3 = scmp.ne.s32.totalorder %s99_s14, %s1606_s28  ;;  %p1611_p4 = scmp.lt.s32.totalorder %s99_s14, %s99_s14 }
  0x98   :  { %p1612_p5 = scmp.lt.s32.totalorder %s1610_s10, %s1606_s28 }
  0x9a   :  { %p1613_p6 = por %p1612_p5, %p1611_p4 }
  0x9c   :  { %p1614_p7 = pnand %p1613_p6, %p1607_p3 }
  0x9e   :  { %1617 = shalt.err (!%p1614_p7)
}
  0x9f   :  { %101 = dma.hbm_to_vmem [thread:$0]  %s2295_s12, 16, %s99_s14, [#allocation15]  }
  0xa0   :  { %s1768_s4 = smov [#allocation19]   ;;  %s1618_s23 = scalar_lea.hbm %s2299_s16, 16 }
  0xa1   :  { %s118_s30 = sshll.u32 %s1768_s4, 4  ;;  %p1619_p8 = scmp.ne.s32.totalorder %s2299_s16, %s1618_s23  ;;  %s119_s30 = int_to_ptr.vmem [resolvable:$true] %s118_s30 }
  0xa2   :  { %p1622_p9 = scmp.lt.u32.totalorder %s1618_s23, %s2299_s16 }
  0xa4   :  { %p1624_p10 = pnand %p1622_p9, %p1619_p8 }
  0xa6   :  { %1627 = shalt.err (!%p1624_p10)
}
  0xa7   :  { %s1628_s25 = scalar_lea.vmem %s119_s30, 16  ;;  %s1632_s12 = scalar_lea.vmem %s119_s30, 32 }
  0xa8   :  { %p1629_p11 = scmp.ne.s32.totalorder %s119_s30, %s1628_s25  ;;  %p1633_p12 = scmp.lt.s32.totalorder %s119_s30, %s119_s30 }
  0xa9   :  { %p1634_p13 = scmp.lt.s32.totalorder %s1632_s12, %s1628_s25 }
  0xab   :  { %p1635_p0 = por %p1634_p13, %p1633_p12 }
  0xad   :  { %p1636_p1 = pnand %p1635_p0, %p1629_p11 }
  0xaf   :  { %1639 = shalt.err (!%p1636_p1)
}
  0xb0   :  { %121 = dma.hbm_to_vmem [thread:$0]  %s2299_s16, 16, %s119_s30, [#allocation18]  }
  0xb1   :  { %1728 = dma.done.wait [#allocation6], 128  }
  0xb2   :  { %1729 = vsyncadd [#allocation6], 4294967168 }
  0xb3   :  { %1730 = dma.done.wait [#allocation9], 96  }
  0xb4   :  { %1731 = vsyncadd [#allocation9], 4294967200 }
  0xb5   :  { %1732 = dma.done.wait [#allocation12], 48  }
  0xb6   :  { %1733 = vsyncadd [#allocation12], 4294967248 }
  0xb7   :  { %1734 = dma.done.wait [#allocation15], 48  }
  0xb8   :  { %1735 = vsyncadd [#allocation15], 4294967248 }
  0xb9   :  { %1736 = dma.done.wait [#allocation18], 48  }
  0xba   :  { %1737 = vsyncadd [#allocation18], 4294967248  ;;  %s158_s26 = sld [smem:[#allocation0]]   ;;  %s1769_s24 = smov 512  }
  0xbb   :  { %170 = sst [smem:[#allocation22]] %s1769_s24  ;;  %s1770_s3 = smov [#allocation2]  }
  0xbc   :  { %172 = sst [smem:[#allocation22 + $0x1]] %s1769_s24  ;;  %s2012_s28 = sshll.u32 %s1770_s3, 4  ;;  %s167_s28 = int_to_ptr.vmem [resolvable:$true] %s2012_s28 }
  0xbd   :  { %s2315_s16 = smov 4   ;;  %s2311_s10 = smov 64  }
  0xbe   :  { %174 = sst [smem:[#allocation22 + $0x2]] %s2315_s16  ;;  %s2316_s8 = smov 128  }
  0xbf   :  { %176 = sst [smem:[#allocation22 + $0x3]] %s2311_s10  ;;  %s2309_s4 = smov 2  }
  0xc0   :  { %178 = sst [smem:[#allocation22 + $0x4]] %s2316_s8  ;;  %s1312_s2 = sshll.u32 %s158_s26, 26 }
  0xc1   :  { %180 = sst [smem:[#allocation22 + $0x5]] %s2309_s4  ;;  %s2019_s30 = sadd.s32 134217728, %s1312_s2 }
  0xc2   :  { %s1775_s27 = smov 256   ;;  %184 = sst [smem:[#allocation22 + $0x7]] %s2311_s10 }
  0xc3   :  { %182 = sst [smem:[#allocation22 + $0x6]] %s1775_s27  ;;  %s2308_s6 = smov [#allocation4]  }
  0xc4   :  { %186 = sst [smem:[#allocation22 + $0x8]] %s2315_s16  ;;  %s1777_s23 = smov [#allocation21]  }
  0xc5   :  { %s2327_s22 = sld [smem:[#allocation56_spill]]  ;;  %s1778_s0 = smov [#allocation3]  }
  0xc6   :  { %s201_s25 = sshll.u32 %s1778_s0, 4  ;;  %s1779_s12 = smov [#allocation4 + $0x2]   ;;  %s2036_s25 = int_to_ptr.vmem [resolvable:$true] %s201_s25 }
  0xc7   :  { %s1780_s14 = smov [#allocation23]  }
  0xcb   :  { %188 = dma.general %s2327_s22, 1024, %s167_s28, %s2308_s6, %s1777_s23, [#allocation22], %s2019_s30, 0  }
  0xcc   :  { %205 = sst [smem:[#allocation24]] %s1775_s27  ;;  %s2328_s3 = sld [smem:[#allocation58_spill]] }
  0xcd   :  { %207 = sst [smem:[#allocation24 + $0x1]] %s1775_s27 }
  0xce   :  { %209 = sst [smem:[#allocation24 + $0x2]] %s2309_s4 }
  0xcf   :  { %211 = sst [smem:[#allocation24 + $0x3]] %s2311_s10 }
  0xd0   :  { %213 = sst [smem:[#allocation24 + $0x4]] %s2316_s8 }
  0xd1   :  { %215 = sst [smem:[#allocation24 + $0x5]] %s2309_s4 }
  0xd2   :  { %217 = sst [smem:[#allocation24 + $0x6]] %s2316_s8 }
  0xd3   :  { %219 = sst [smem:[#allocation24 + $0x7]] %s2311_s10 }
  0xd4   :  { %221 = sst [smem:[#allocation24 + $0x8]] %s2315_s16 }
  0xd5   :  { %223 = dma.general %s2328_s3, 4096, %s2036_s25, %s1779_s12, %s1780_s14, [#allocation24], %s2019_s30, 0  }
  0xd6   :  { %v224_v0 = vld [vmem:[#allocation5] sm:$0xff] }
  0xd7   :  { %1738 = dma.done.wait [#allocation4], 1024 }
  0xd8   :  { %1739 = vsyncadd [#allocation4], 4294966272 }
  0xd9   :  { %1740 = dma.done.wait [#allocation4 + $0x2], 4096 }
  0xda   :  { %1741 = vsyncadd [#allocation4 + $0x2], 4294963200  ;;  %250 = sst [smem:[#allocation26]] %s1775_s27  ;;  %s1781_s2 = smov [#allocation2 + $0x200]   ;;  %v1782_v1 = vmov 0  }
  0xdb   :  { %s2048_s23 = sshll.u32 %s1781_s2, 4  ;;  %376 = vmatprep.mubr.bf16.mxu0 %v1782_v1  ;;  %417 = vmatprep.mubr.bf16.mxu1 %v1782_v1  ;;  %252 = sst [smem:[#allocation26 + $0x1]] %s1769_s24  ;;  %s247_s23 = int_to_ptr.vmem [resolvable:$true] %s2048_s23 }
  0xdc   :  { %254 = sst [smem:[#allocation26 + $0x2]] %s2309_s4  ;;  %s1783_s5 = smov [#allocation3 + $0x100]  }
  0xdd   :  { %256 = sst [smem:[#allocation26 + $0x3]] %s2311_s10  ;;  %s272_s29 = sshll.u32 %s1783_s5, 4  ;;  %s2059_s29 = int_to_ptr.vmem [resolvable:$true] %s272_s29 }
  0xde   :  { %258 = sst [smem:[#allocation26 + $0x4]] %s2316_s8  ;;  %s2314_s22 = smov [#allocation4 + $0x1]  }
  0xdf   :  { %260 = sst [smem:[#allocation26 + $0x5]] %s2309_s4  ;;  %s1785_s0 = smov [#allocation25]  }
  0xe0   :  { %262 = sst [smem:[#allocation26 + $0x6]] %s2316_s8  ;;  %s2329_s1 = sld [smem:[#allocation60_spill]] }
  0xe1   :  { %264 = sst [smem:[#allocation26 + $0x7]] %s2311_s10  ;;  %s1640_s2 = scalar_lea.hbm %s2290_s7, 1024 }
  0xe2   :  { %266 = sst [smem:[#allocation26 + $0x8]] %s2315_s16  ;;  %p1641_p2 = scmp.ne.s32.totalorder %s2290_s7, %s1640_s2 }
  0xe3   :  { %p1644_p3 = scmp.lt.u32.totalorder %s1640_s2, %s2290_s7 }
  0xe5   :  { %p1646_p4 = pnand %p1644_p3, %p1641_p2 }
  0xe6   :  { %268 = dma.general %s2329_s1, 4096, %s247_s23, %s2314_s22, %s1785_s0, [#allocation26], %s2019_s30, 0  }
  0xe7   :  { %1649 = shalt.err (!%p1646_p4)  }
  0xe8   :  { %s1650_s0 = scalar_lea.vmem %s2059_s29, 1024  ;;  %s2082_s12 = scalar_lea.vmem %s2036_s25, 8192 }
  0xe9   :  { %p1651_p5 = scmp.ne.s32.totalorder %s2059_s29, %s1650_s0  ;;  %p1655_p6 = scmp.lt.s32.totalorder %s2059_s29, %s2036_s25 }
  0xea   :  { %p1656_p7 = scmp.lt.s32.totalorder %s2082_s12, %s1650_s0 }
  0xec   :  { %p1657_p8 = por %p1656_p7, %p1655_p6 }
  0xee   :  { %p1658_p9 = pnand %p1657_p8, %p1651_p5 }
  0xf0   :  { %1661 = shalt.err (!%p1658_p9)  }
  0xf1   :  { %s2313_s10 = smov 8   ;;  %v279_v2 = vld [vmem:[#allocation2 + $0x8] sm:$0xff]  ;;  %v278_v3 = vld [vmem:[#allocation2] sm:$0xff]  ;;  %v281_v5 = vld [vmem:[#allocation2 + $0x18] sm:$0xff]  ;;  %v318_v10 = vpack.c.bf16 %v224_v0, %v224_v0  ;;  %vm340_vm0 = vcmask 261120   ;;  %v320_v43 = vlaneseq }
  0xf2   :  { %275 = dma.hbm_to_vmem [thread:$0]  %s2290_s7, 1024, %s2059_s29, [#allocation4 + $0x3], %s2316_s8, %s1775_s27, %s2313_s10  ;;  %v283_v4 = vld [vmem:[#allocation2 + $0x28] sm:$0xff]  ;;  %344 = vmatprep.subr.bf16.mxu0 %v279_v2  ;;  %v280_v6 = vld [vmem:[#allocation2 + $0x10] sm:$0xff]  ;;  %385 = vmatprep.subr.bf16.mxu1 %v281_v5  ;;  %v285_v7 = vld [vmem:[#allocation2 + $0x38] sm:$0xff] }
  0xf3   :  { %345 = vmatpush1.bf16.msra.mxu0 %v278_v3  ;;  %v282_v8 = vld [vmem:[#allocation2 + $0x20] sm:$0xff]  ;;  %386 = vmatpush1.bf16.msra.mxu1 %v280_v6  ;;  %v284_v9 = vld [vmem:[#allocation2 + $0x30] sm:$0xff]  ;;  %v287_v11 = vld [vmem:[#allocation3 + $0x8] sm:$0xff]  ;;  %v321_v44 = vshrl.u32 %v320_v43, 7 }
  0xf4   :  { %346 = vmatprep.subr.bf16.mxu0 %v283_v4  ;;  %387 = vmatprep.subr.bf16.mxu1 %v285_v7  ;;  %v286_v12 = vld [vmem:[#allocation3] sm:$0xff]  ;;  %v289_v13 = vld [vmem:[#allocation3 + $0x18] sm:$0xff]  ;;  %v288_v14 = vld [vmem:[#allocation3 + $0x10] sm:$0xff] }
  0xf5   :  { %v291_v15 = vld [vmem:[#allocation3 + $0x28] sm:$0xff]  ;;  %v290_v16 = vld [vmem:[#allocation3 + $0x20] sm:$0xff]  ;;  %v293_v17 = vld [vmem:[#allocation3 + $0x38] sm:$0xff]  ;;  %v2099_v45 = vsub.s32 0, %v321_v44  ;;  %v2101_v47 = vsub.s32 1, %v321_v44  ;;  %v330_v60 = vsub.s32 2, %v321_v44 }
  0xf6   :  { %v292_v18 = vld [vmem:[#allocation3 + $0x30] sm:$0xff]  ;;  %v295_v19 = vld [vmem:[#allocation3 + $0x48] sm:$0xff]  ;;  %v294_v20 = vld [vmem:[#allocation3 + $0x40] sm:$0xff]  ;;  %v334_v62 = vsub.s32 3, %v321_v44 }
  0xf7   :  { %347 = vmatpush1.bf16.msra.mxu0 %v282_v8  ;;  %388 = vmatpush1.bf16.msra.mxu1 %v284_v9  ;;  %v297_v21 = vld [vmem:[#allocation3 + $0x58] sm:$0xff]  ;;  %v296_v22 = vld [vmem:[#allocation3 + $0x50] sm:$0xff]  ;;  %v299_v23 = vld [vmem:[#allocation3 + $0x68] sm:$0xff] }
  0xf8   :  { %441 = vmatprep.subr.bf16.mxu1 %v287_v11  ;;  %v298_v24 = vld [vmem:[#allocation3 + $0x60] sm:$0xff]  ;;  %v301_v25 = vld [vmem:[#allocation3 + $0x78] sm:$0xff]  ;;  %v300_v26 = vld [vmem:[#allocation3 + $0x70] sm:$0xff] }
  0xf9   :  { %v303_v27 = vld [vmem:[#allocation3 + $0x88] sm:$0xff]  ;;  %v302_v28 = vld [vmem:[#allocation3 + $0x80] sm:$0xff]  ;;  %v305_v29 = vld [vmem:[#allocation3 + $0x98] sm:$0xff] }
  0xfa   :  { %1318 = vmatmul.mubr.msk.bf16.vlgmr.msra.gmra.mrb[0].mxu0 %vm340_vm0, %v318_v10  ;;  %1319 = vmatmul.mubr.msk.bf16.vlgmr.msra.gmra.mrb[0].mxu1 %vm340_vm0, %v318_v10  ;;  %v304_v30 = vld [vmem:[#allocation3 + $0x90] sm:$0xff]  ;;  %v307_v31 = vld [vmem:[#allocation3 + $0xa8] sm:$0xff]  ;;  %v306_v32 = vld [vmem:[#allocation3 + $0xa0] sm:$0xff] }
  0xfb   :  { %442 = vmatpush1.bf16.msra.mxu1 %v286_v12  ;;  %v309_v33 = vld [vmem:[#allocation3 + $0xb8] sm:$0xff]  ;;  %v308_v34 = vld [vmem:[#allocation3 + $0xb0] sm:$0xff]  ;;  %v311_v35 = vld [vmem:[#allocation3 + $0xc8] sm:$0xff] }
  0xfc   :  { %443 = vmatprep.subr.bf16.mxu1 %v289_v13  ;;  %v310_v36 = vld [vmem:[#allocation3 + $0xc0] sm:$0xff]  ;;  %v313_v37 = vld [vmem:[#allocation3 + $0xd8] sm:$0xff]  ;;  %v312_v38 = vld [vmem:[#allocation3 + $0xd0] sm:$0xff] }
  0xfd   :  { %v315_v39 = vld [vmem:[#allocation3 + $0xe8] sm:$0xff]  ;;  %v314_v40 = vld [vmem:[#allocation3 + $0xe0] sm:$0xff]  ;;  %v317_v41 = vld [vmem:[#allocation3 + $0xf8] sm:$0xff] }
  0xfe   :  { %v316_v42 = vld [vmem:[#allocation3 + $0xf0] sm:$0xff]  ;;  %v276_v46 = vld [vmem:[#allocation8] sm:$0xf]  ;;  %v277_v61 = vld [vmem:[#allocation10] sm:$0x3] }
  0xff   :  { %444 = vmatpush1.bf16.msra.mxu1 %v288_v14  ;;  %v323_v48 = vrot.slane %v276_v46, %v2099_v45  ;;  %v327_v49 = vrot.slane %v276_v46, %v2101_v47  ;;  %v331_v63 = vrot.slane %v276_v46, %v330_v60  ;;  %v434_v0 = vrot.slane %v277_v61, %v2099_v45 }
 0x100   :  { %445 = vmatprep.subr.bf16.mxu1 %v291_v15  ;;  %v335_v2 = vrot.slane %v276_v46, %v334_v62  ;;  %v438_v3 = vrot.slane %v277_v61, %v2101_v47 }
 0x101   :  { %v1402_v4 = vadd.f32 %v434_v0, %v331_v63 }
 0x102   :  { %v1404_v5 = vadd.f32 %v438_v3, %v335_v2 }
 0x103   :  { %446 = vmatpush1.bf16.msra.mxu1 %v290_v16 }
 0x104   :  { %447 = vmatprep.subr.bf16.mxu1 %v293_v17 }
 0x107   :  { %448 = vmatpush1.bf16.msra.mxu1 %v292_v18 }
 0x108   :  { %449 = vmatprep.subr.bf16.mxu1 %v295_v19 }
 0x10b   :  { %450 = vmatpush1.bf16.msra.mxu1 %v294_v20 }
 0x10c   :  { %451 = vmatprep.subr.bf16.mxu1 %v297_v21 }
 0x10f   :  { %452 = vmatpush1.bf16.msra.mxu1 %v296_v22 }
 0x110   :  { %453 = vmatprep.subr.bf16.mxu1 %v299_v23 }
 0x113   :  { %454 = vmatpush1.bf16.msra.mxu1 %v298_v24 }
 0x114   :  { %455 = vmatprep.subr.bf16.mxu1 %v301_v25 }
 0x117   :  { %456 = vmatpush1.bf16.msra.mxu1 %v300_v26 }
 0x118   :  { %457 = vmatprep.subr.bf16.mxu1 %v303_v27 }
 0x11b   :  { %458 = vmatpush1.bf16.msra.mxu1 %v302_v28 }
 0x11c   :  { %459 = vmatprep.subr.bf16.mxu1 %v305_v29 }
 0x11f   :  { %460 = vmatpush1.bf16.msra.mxu1 %v304_v30 }
 0x120   :  { %461 = vmatprep.subr.bf16.mxu1 %v307_v31 }
 0x123   :  { %462 = vmatpush1.bf16.msra.mxu1 %v306_v32 }
 0x124   :  { %463 = vmatprep.subr.bf16.mxu1 %v309_v33 }
 0x127   :  { %464 = vmatpush1.bf16.msra.mxu1 %v308_v34 }
 0x128   :  { %465 = vmatprep.subr.bf16.mxu1 %v311_v35 }
 0x12b   :  { %466 = vmatpush1.bf16.msra.mxu1 %v310_v36 }
 0x12c   :  { %467 = vmatprep.subr.bf16.mxu1 %v313_v37 }
 0x12f   :  { %468 = vmatpush1.bf16.msra.mxu1 %v312_v38 }
 0x130   :  { %469 = vmatprep.subr.bf16.mxu1 %v315_v39 }
 0x133   :  { %470 = vmatpush1.bf16.msra.mxu1 %v314_v40 }
 0x134   :  { %471 = vmatprep.subr.bf16.mxu1 %v317_v41 }
 0x137   :  { %472 = vmatpush1.bf16.msra.mxu1 %v316_v42 }
 0x1cd   :  { %v378_v50 = vpop.f32.mrb[0].mxu0 }
 0x1ce   :  { %v379_v51 = vadd.f32 %v378_v50, %v323_v48  ;;  %v380_v52 = vpop.f32.mrb[1].mxu0 }
 0x1cf   :  { %v381_v53 = vadd.f32 %v380_v52, %v327_v49  ;;  %v382_v54 = vpop.f32.mrb[2].mxu0 }
 0x1d0   :  { %v426_v55 = vmax.f32 %v379_v51, 0.0  ;;  %v383_v56 = vpop.f32.mrb[3].mxu0 }
 0x1d1   :  { %v427_v57 = vmax.f32 %v381_v53, 0.0 }
 0x1d2   :  { %v428_v59 = vpack.c.bf16 %v426_v55, %v426_v55 }
 0x1d3   :  { %v429_v58 = vpack.c.bf16 %v427_v57, %v427_v57 }
 0x1d5   :  { %473 = vmatprep.mubr.bf16.mxu1 %v429_v58 }
 0x1d6   :  { %474 = vmatmul.mubr.bf16.vlgmr.msra.gmra.mrb[0].mxu1 %v428_v59 }
 0x2a9   :  { %v475_v6 = vpop.f32.mrb[0].mxu1 }
 0x2aa   :  { %v2107_v7 = vadd.f32 %v1402_v4, %v475_v6  ;;  %v477_v8 = vpop.f32.mrb[1].mxu1 }
 0x2ab   :  { %v1405_v9 = vadd.f32 %v1404_v5, %v477_v8  ;;  %v479_v10 = vpop.f32.mrb[2].mxu1 }
 0x2ac   :  { %v484_v11 = vmax.f32 %v2107_v7, 0.0  ;;  %v480_v12 = vpop.f32.mrb[3].mxu1 }
 0x2ad   :  { %v485_v13 = vmax.f32 %v1405_v9, 0.0 }
 0x2ae   :  { %1742 = dma.done.wait [#allocation4 + $0x1], 4096 }
 0x2af   :  { %1743 = vsyncadd [#allocation4 + $0x1], 4294963200 }
 0x2b0   :  { %1744 = dma.done.wait [#allocation4 + $0x3], 1024 }
 0x2b1   :  { %1745 = vsyncadd [#allocation4 + $0x3], 4294966272  ;;  %507 = sst [smem:[#allocation29]] %s1775_s27  ;;  %s2330_s7 = smov 2  }
 0x2b2   :  { %509 = sst [smem:[#allocation29 + $0x1]] %s1769_s24  ;;  %s2331_s14 = smov 64  }
 0x2b3   :  { %511 = sst [smem:[#allocation29 + $0x2]] %s2330_s7  ;;  %s1787_s1 = smov [#allocation28]  }
 0x2b4   :  { %513 = sst [smem:[#allocation29 + $0x3]] %s2331_s14  ;;  %s2332_s26 = smov [#allocation4]  }
 0x2b5   :  { %515 = sst [smem:[#allocation29 + $0x4]] %s2316_s8 }
 0x2b6   :  { %517 = sst [smem:[#allocation29 + $0x5]] %s2330_s7 }
 0x2b7   :  { %519 = sst [smem:[#allocation29 + $0x6]] %s2316_s8 }
 0x2b8   :  { %521 = sst [smem:[#allocation29 + $0x7]] %s2331_s14 }
 0x2b9   :  { %523 = sst [smem:[#allocation29 + $0x8]] %s2315_s16 }
 0x2ba   :  { %525 = dma.general %s2292_s9, 2048, %s167_s28, %s2332_s26, %s1787_s1, [#allocation29], %s2019_s30, 0  }
 0x2bb   :  { %v564_v14 = vld [vmem:[%s2294_s11] sm:$0xff]  ;;  %v566_v15 = vld [vmem:[%s2294_s11 + $0x8] sm:$0xff]  ;;  %v568_v16 = vld [vmem:[%s2294_s11 + $0x10] sm:$0xff] }
 0x2bc   :  { %565 = vst [vmem:[#allocation3] sm:$0xff] %v564_v14  ;;  %567 = vst [vmem:[#allocation3 + $0x10] sm:$0xff] %v566_v15  ;;  %v570_v17 = vld [vmem:[%s2294_s11 + $0x18] sm:$0xff] }
 0x2bd   :  { %569 = vst [vmem:[#allocation3 + $0x20] sm:$0xff] %v568_v16  ;;  %571 = vst [vmem:[#allocation3 + $0x30] sm:$0xff] %v570_v17 }
 0x2be   :  { %579 = vsyncadd [#allocation4 + $0x2], 512  ;;  %v583_v18 = vld [vmem:[#allocation2 + $0x208] sm:$0xff]  ;;  %v582_v19 = vld [vmem:[#allocation2 + $0x200] sm:$0xff]  ;;  %v623_v20 = vpack.c.bf16 %v485_v13, %v485_v13  ;;  %v622_v53 = vpack.c.bf16 %v484_v11, %v484_v11  ;;  %v1788_v54 = vmov 0.0   ;;  %vm1789_vm1 = vmmov 0  }
 0x2bf   :  { %635 = vmatprep.subr.bf16.mxu0 %v583_v18  ;;  %v585_v21 = vld [vmem:[#allocation2 + $0x228] sm:$0xff]  ;;  %v584_v22 = vld [vmem:[#allocation2 + $0x220] sm:$0xff]  ;;  %v615_v56 = vld [vmem:[#allocation3 + $0x110] sm:$0xff] }
 0x2c0   :  { %636 = vmatpush1.bf16.msra.mxu0 %v582_v19  ;;  %667 = vmatprep.mubr.bf16.mxu0 %v623_v20  ;;  %v587_v23 = vld [vmem:[#allocation2 + $0x248] sm:$0xff]  ;;  %v586_v24 = vld [vmem:[#allocation2 + $0x240] sm:$0xff]  ;;  %v617_v58 = vld [vmem:[#allocation3 + $0x130] sm:$0xff] }
 0x2c1   :  { %637 = vmatprep.subr.bf16.mxu0 %v585_v21  ;;  %v589_v25 = vld [vmem:[#allocation2 + $0x268] sm:$0xff]  ;;  %v588_v26 = vld [vmem:[#allocation2 + $0x260] sm:$0xff]  ;;  %v619_v60 = vld [vmem:[#allocation3 + $0x150] sm:$0xff] }
 0x2c2   :  { %v591_v27 = vld [vmem:[#allocation2 + $0x288] sm:$0xff]  ;;  %v590_v28 = vld [vmem:[#allocation2 + $0x280] sm:$0xff]  ;;  %v621_v62 = vld [vmem:[#allocation3 + $0x170] sm:$0xff] }
 0x2c3   :  { %v593_v29 = vld [vmem:[#allocation2 + $0x2a8] sm:$0xff]  ;;  %v592_v30 = vld [vmem:[#allocation2 + $0x2a0] sm:$0xff]  ;;  %v1322_v10 = vld [vmem:[#allocation13] ss:$0 sm:$0xff] }
 0x2c4   :  { %638 = vmatpush1.bf16.msra.mxu0 %v584_v22  ;;  %v595_v31 = vld [vmem:[#allocation2 + $0x2c8] sm:$0xff]  ;;  %v594_v32 = vld [vmem:[#allocation2 + $0x2c0] sm:$0xff] }
 0x2c5   :  { %639 = vmatprep.subr.bf16.mxu0 %v587_v23  ;;  %v597_v33 = vld [vmem:[#allocation2 + $0x2e8] sm:$0xff]  ;;  %v596_v34 = vld [vmem:[#allocation2 + $0x2e0] sm:$0xff] }
 0x2c6   :  { %v599_v35 = vld [vmem:[#allocation2 + $0x308] sm:$0xff]  ;;  %v598_v36 = vld [vmem:[#allocation2 + $0x300] sm:$0xff] }
 0x2c7   :  { %v601_v37 = vld [vmem:[#allocation2 + $0x328] sm:$0xff]  ;;  %v600_v38 = vld [vmem:[#allocation2 + $0x320] sm:$0xff] }
 0x2c8   :  { %640 = vmatpush1.bf16.msra.mxu0 %v586_v24  ;;  %v603_v39 = vld [vmem:[#allocation2 + $0x348] sm:$0xff]  ;;  %v602_v40 = vld [vmem:[#allocation2 + $0x340] sm:$0xff] }
 0x2c9   :  { %641 = vmatprep.subr.bf16.mxu0 %v589_v25  ;;  %v605_v41 = vld [vmem:[#allocation2 + $0x368] sm:$0xff]  ;;  %v604_v42 = vld [vmem:[#allocation2 + $0x360] sm:$0xff] }
 0x2ca   :  { %v607_v43 = vld [vmem:[#allocation2 + $0x388] sm:$0xff]  ;;  %v606_v44 = vld [vmem:[#allocation2 + $0x380] sm:$0xff] }
 0x2cb   :  { %v609_v46 = vld [vmem:[#allocation2 + $0x3a8] sm:$0xff]  ;;  %v608_v48 = vld [vmem:[#allocation2 + $0x3a0] sm:$0xff] }
 0x2cc   :  { %642 = vmatpush1.bf16.msra.mxu0 %v588_v26  ;;  %v611_v49 = vld [vmem:[#allocation2 + $0x3c8] sm:$0xff]  ;;  %v610_v50 = vld [vmem:[#allocation2 + $0x3c0] sm:$0xff] }
 0x2cd   :  { %643 = vmatprep.subr.bf16.mxu0 %v591_v27  ;;  %v613_v51 = vld [vmem:[#allocation2 + $0x3e8] sm:$0xff]  ;;  %v612_v52 = vld [vmem:[#allocation2 + $0x3e0] sm:$0xff] }
 0x2ce   :  { %v614_v55 = vld [vmem:[#allocation3 + $0x100] sm:$0xff]  ;;  %v580_v63 = vld [vmem:[#allocation11] sm:$0x3] }
 0x2cf   :  { %v616_v57 = vld [vmem:[#allocation3 + $0x120] sm:$0xff]  ;;  %v628_v0 = vrot.slane %v580_v63, %v2099_v45  ;;  %v632_v9 = vrot.slane %v580_v63, %v2101_v47 }
 0x2d0   :  { %644 = vmatpush1.bf16.msra.mxu0 %v590_v28  ;;  %v618_v59 = vld [vmem:[#allocation3 + $0x140] sm:$0xff] }
 0x2d1   :  { %645 = vmatprep.subr.bf16.mxu0 %v593_v29  ;;  %v620_v61 = vld [vmem:[#allocation3 + $0x160] sm:$0xff] }
 0x2d4   :  { %646 = vmatpush1.bf16.msra.mxu0 %v592_v30 }
 0x2d5   :  { %647 = vmatprep.subr.bf16.mxu0 %v595_v31 }
 0x2d8   :  { %648 = vmatpush1.bf16.msra.mxu0 %v594_v32 }
 0x2d9   :  { %649 = vmatprep.subr.bf16.mxu0 %v597_v33 }
 0x2dc   :  { %650 = vmatpush1.bf16.msra.mxu0 %v596_v34 }
 0x2dd   :  { %651 = vmatprep.subr.bf16.mxu0 %v599_v35 }
 0x2e0   :  { %652 = vmatpush1.bf16.msra.mxu0 %v598_v36 }
 0x2e1   :  { %653 = vmatprep.subr.bf16.mxu0 %v601_v37 }
 0x2e4   :  { %654 = vmatpush1.bf16.msra.mxu0 %v600_v38 }
 0x2e5   :  { %655 = vmatprep.subr.bf16.mxu0 %v603_v39 }
 0x2e8   :  { %656 = vmatpush1.bf16.msra.mxu0 %v602_v40 }
 0x2e9   :  { %657 = vmatprep.subr.bf16.mxu0 %v605_v41 }
 0x2ec   :  { %658 = vmatpush1.bf16.msra.mxu0 %v604_v42 }
 0x2ed   :  { %659 = vmatprep.subr.bf16.mxu0 %v607_v43 }
 0x2f0   :  { %660 = vmatpush1.bf16.msra.mxu0 %v606_v44 }
 0x2f1   :  { %661 = vmatprep.subr.bf16.mxu0 %v609_v46 }
 0x2f4   :  { %662 = vmatpush1.bf16.msra.mxu0 %v608_v48 }
 0x2f5   :  { %663 = vmatprep.subr.bf16.mxu0 %v611_v49 }
 0x2f8   :  { %664 = vmatpush1.bf16.msra.mxu0 %v610_v50 }
 0x2f9   :  { %665 = vmatprep.subr.bf16.mxu0 %v613_v51 }
 0x2fc   :  { %666 = vmatpush1.bf16.msra.mxu0 %v612_v52 }
 0x2fd   :  { %1356 = vmatprep.subr.bf16.mxu0 %v1788_v54 }
 0x2ff   :  { %668 = vmatmul.mubr.bf16.vlgmr.msra.gmra.mrb[4].mxu0 %v622_v53 }
 0x300   :  { %1357 = vmatpush3.bf16.msra.mxu0 %v614_v55  ;;  %1372 = vmatprep.mubr.msk.bf16.mxu0 %vm1789_vm1, %v1788_v54 }
 0x301   :  { %1358 = vmatprep.subr.bf16.mxu0 %v1788_v54 }
 0x304   :  { %1359 = vmatpush3.bf16.msra.mxu0 %v615_v56 }
 0x305   :  { %1360 = vmatprep.subr.bf16.mxu0 %v1788_v54 }
 0x308   :  { %1361 = vmatpush3.bf16.msra.mxu0 %v616_v57 }
 0x309   :  { %1362 = vmatprep.subr.bf16.mxu0 %v1788_v54 }
 0x30c   :  { %1363 = vmatpush3.bf16.msra.mxu0 %v617_v58 }
 0x30d   :  { %1364 = vmatprep.subr.bf16.mxu0 %v1788_v54 }
 0x310   :  { %1365 = vmatpush3.bf16.msra.mxu0 %v618_v59 }
 0x311   :  { %1366 = vmatprep.subr.bf16.mxu0 %v1788_v54 }
 0x314   :  { %1367 = vmatpush3.bf16.msra.mxu0 %v619_v60 }
 0x315   :  { %1368 = vmatprep.subr.bf16.mxu0 %v1788_v54 }
 0x318   :  { %1369 = vmatpush3.bf16.msra.mxu0 %v620_v61 }
 0x319   :  { %1370 = vmatprep.subr.bf16.mxu0 %v1788_v54 }
 0x31c   :  { %1371 = vmatpush3.bf16.msra.mxu0 %v621_v62 }
 0x3d2   :  { %v669_v2 = vpop.f32.mrb[4].mxu0 }
 0x3d3   :  { %v670_v3 = vadd.f32 %v669_v2, %v628_v0  ;;  %v671_v4 = vpop.f32.mrb[5].mxu0 }
 0x3d4   :  { %v673_v5 = vpop.f32.mrb[6].mxu0  ;;  %v672_v12 = vadd.f32 %v671_v4, %v632_v9 }
 0x3d5   :  { %v676_v6 = vmax.f32 %v670_v3, 0.0  ;;  %v674_v7 = vpop.f32.mrb[7].mxu0 }
 0x3d7   :  { %v677_v8 = vpack.c.bf16 %v676_v6, %v676_v6 }
 0x3d9   :  { %1373 = vmatmul.mubr.bf16.vlgmr.msra.gmra.mrb[8].mxu0 %v677_v8 }
 0x4ac   :  { %v718_v11 = vpop.f32.mrb[8].mxu0 }
 0x4ad   :  { %v719_v13 = vadd.f32 %v1322_v10, %v718_v11  ;;  %v1374_v14 = vpop.f32.mrb[9].mxu0 }
 0x4ae   :  { %v721_v15 = vpop.f32.mrb[10].mxu0 }
 0x4af   :  { %v2153_v16 = vadd.f32 %v719_v13, %v672_v12  ;;  %v1375_v17 = vpop.f32.mrb[11].mxu0 }
 0x4b1   :  { %v725_v18 = vmax.f32 %v2153_v16, 0.0 }
 0x4b2   :  { %1746 = dma.done.wait [#allocation4], 2048 }
 0x4b3   :  { %1747 = vsyncadd [#allocation4], 4294965248 }
 0x4b4   :  { %1748 = dma.done.wait [#allocation4 + $0x2], 512 }
 0x4b5   :  { %1749 = vsyncadd [#allocation4 + $0x2], 4294966784  ;;  %838 = vmatprep.mubr.bf16.mxu1 %v1782_v1  ;;  %1376 = vmatprep.subr.bf16.mxu0 %v1788_v54  ;;  %748 = sst [smem:[#allocation32]] %s1775_s27  ;;  %s2333_s9 = smov 128  }
 0x4b6   :  { %1384 = vmatprep.mubr.msk.bf16.mxu0 %vm1789_vm1, %v1788_v54  ;;  %750 = sst [smem:[#allocation32 + $0x1]] %s1769_s24  ;;  %s2334_s11 = smov 4  }
 0x4b7   :  { %752 = sst [smem:[#allocation32 + $0x2]] %s2330_s7  ;;  %s1790_s28 = smov [#allocation31]  }
 0x4b8   :  { %754 = sst [smem:[#allocation32 + $0x3]] %s2331_s14  ;;  %s2335_s16 = smov [#allocation4 + $0x1]  }
 0x4b9   :  { %756 = sst [smem:[#allocation32 + $0x4]] %s2333_s9  ;;  %s1662_s1 = scalar_lea.hbm %s2298_s15, 256 }
 0x4ba   :  { %758 = sst [smem:[#allocation32 + $0x5]] %s2330_s7  ;;  %p1663_p10 = scmp.ne.s32.totalorder %s2298_s15, %s1662_s1 }
 0x4bb   :  { %760 = sst [smem:[#allocation32 + $0x6]] %s2333_s9  ;;  %p1666_p11 = scmp.lt.u32.totalorder %s1662_s1, %s2298_s15 }
 0x4bc   :  { %762 = sst [smem:[#allocation32 + $0x7]] %s2331_s14 }
 0x4bd   :  { %764 = sst [smem:[#allocation32 + $0x8]] %s2334_s11  ;;  %p1668_p12 = pnand %p1666_p11, %p1663_p10 }
 0x4be   :  { %766 = dma.general %s2296_s13, 1024, %s247_s23, %s2335_s16, %s1790_s28, [#allocation32], %s2019_s30, 0  }
 0x4bf   :  { %1671 = shalt.err (!%p1668_p12)  }
 0x4c0   :  { %s1672_s13 = scalar_lea.vmem %s2059_s29, 256 }
 0x4c1   :  { %p1673_p13 = scmp.ne.s32.totalorder %s2059_s29, %s1672_s13  ;;  %p1678_p0 = scmp.lt.s32.totalorder %s2082_s12, %s1672_s13 }
 0x4c3   :  { %p1679_p1 = por %p1678_p0, %p1655_p6 }
 0x4c5   :  { %p1680_p2 = pnand %p1679_p1, %p1673_p13 }
 0x4c7   :  { %1683 = shalt.err (!%p1680_p2)  }
 0x4c8   :  { %s2336_s30 = smov 8   ;;  %v775_v19 = vld [vmem:[#allocation2 + $0x8] sm:$0xff]  ;;  %v774_v20 = vld [vmem:[#allocation2] sm:$0xff]  ;;  %v794_v37 = vpack.c.bf16 %v725_v18, %v725_v18  ;;  %v772_v40 = vld [vmem:[#allocation14] sm:$0x3]  ;;  %vm855_vm2 = vcmask 523264  }
 0x4c9   :  { %771 = dma.hbm_to_vmem [thread:$0]  %s2298_s15, 256, %s2059_s29, [#allocation4 + $0x3], %s2333_s9, %s1775_s27, %s2336_s30  ;;  %v777_v21 = vld [vmem:[#allocation2 + $0x28] sm:$0xff]  ;;  %806 = vmatprep.subr.bf16.mxu1 %v775_v19  ;;  %v776_v22 = vld [vmem:[#allocation2 + $0x20] sm:$0xff]  ;;  %v799_v41 = vrot.slane %v772_v40, %v2099_v45  ;;  %v803_v51 = vrot.slane %v772_v40, %v2101_v47  ;;  %v1325_v52 = vld [vmem:[#allocation16] ss:$0 sm:$0xff] }
 0x4ca   :  { %807 = vmatpush1.bf16.msra.mxu1 %v774_v20  ;;  %v779_v23 = vld [vmem:[#allocation2 + $0x48] sm:$0xff]  ;;  %v790_v24 = vld [vmem:[#allocation3] sm:$0xff]  ;;  %v791_v26 = vld [vmem:[#allocation3 + $0x10] sm:$0xff] }
 0x4cb   :  { %808 = vmatprep.subr.bf16.mxu1 %v777_v21  ;;  %1377 = vmatpush3.bf16.msra.mxu0 %v790_v24  ;;  %v778_v25 = vld [vmem:[#allocation2 + $0x40] sm:$0xff]  ;;  %v781_v27 = vld [vmem:[#allocation2 + $0x68] sm:$0xff]  ;;  %v793_v39 = vld [vmem:[#allocation3 + $0x30] sm:$0xff] }
 0x4cc   :  { %1378 = vmatprep.subr.bf16.mxu0 %v1788_v54  ;;  %v780_v28 = vld [vmem:[#allocation2 + $0x60] sm:$0xff]  ;;  %v783_v29 = vld [vmem:[#allocation2 + $0x88] sm:$0xff] }
 0x4cd   :  { %v782_v30 = vld [vmem:[#allocation2 + $0x80] sm:$0xff]  ;;  %v785_v31 = vld [vmem:[#allocation2 + $0xa8] sm:$0xff] }
 0x4ce   :  { %809 = vmatpush1.bf16.msra.mxu1 %v776_v22  ;;  %v784_v32 = vld [vmem:[#allocation2 + $0xa0] sm:$0xff]  ;;  %v787_v33 = vld [vmem:[#allocation2 + $0xc8] sm:$0xff] }
 0x4cf   :  { %810 = vmatprep.subr.bf16.mxu1 %v779_v23  ;;  %1379 = vmatpush3.bf16.msra.mxu0 %v791_v26  ;;  %v786_v34 = vld [vmem:[#allocation2 + $0xc0] sm:$0xff]  ;;  %v789_v35 = vld [vmem:[#allocation2 + $0xe8] sm:$0xff] }
 0x4d0   :  { %1380 = vmatprep.subr.bf16.mxu0 %v1788_v54  ;;  %v788_v36 = vld [vmem:[#allocation2 + $0xe0] sm:$0xff] }
 0x4d1   :  { %v792_v38 = vld [vmem:[#allocation3 + $0x20] sm:$0xff] }
 0x4d2   :  { %811 = vmatpush1.bf16.msra.mxu1 %v778_v25 }
 0x4d3   :  { %812 = vmatprep.subr.bf16.mxu1 %v781_v27  ;;  %1381 = vmatpush3.bf16.msra.mxu0 %v792_v38 }
 0x4d4   :  { %1382 = vmatprep.subr.bf16.mxu0 %v1788_v54 }
 0x4d6   :  { %813 = vmatpush1.bf16.msra.mxu1 %v780_v28 }
 0x4d7   :  { %814 = vmatprep.subr.bf16.mxu1 %v783_v29  ;;  %1383 = vmatpush3.bf16.msra.mxu0 %v793_v39 }
 0x4da   :  { %815 = vmatpush1.bf16.msra.mxu1 %v782_v30 }
 0x4db   :  { %816 = vmatprep.subr.bf16.mxu1 %v785_v31 }
 0x4de   :  { %817 = vmatpush1.bf16.msra.mxu1 %v784_v32 }
 0x4df   :  { %818 = vmatprep.subr.bf16.mxu1 %v787_v33 }
 0x4e2   :  { %819 = vmatpush1.bf16.msra.mxu1 %v786_v34 }
 0x4e3   :  { %820 = vmatprep.subr.bf16.mxu1 %v789_v35 }
 0x4e6   :  { %821 = vmatpush1.bf16.msra.mxu1 %v788_v36 }
 0x4e9   :  { %839 = vmatmul.mubr.bf16.vlgmr.msra.gmra.mrb[4].mxu1 %v794_v37 }
 0x5bc   :  { %v840_v42 = vpop.f32.mrb[4].mxu1 }
 0x5bd   :  { %v841_v43 = vadd.f32 %v840_v42, %v799_v41  ;;  %v842_v44 = vpop.f32.mrb[5].mxu1 }
 0x5be   :  { %v844_v46 = vpop.f32.mrb[6].mxu1  ;;  %v843_v55 = vadd.f32 %v842_v44, %v803_v51 }
 0x5bf   :  { %v847_v48 = vmax.f32 %v841_v43, 0.0  ;;  %v845_v49 = vpop.f32.mrb[7].mxu1 }
 0x5c1   :  { %v848_v50 = vpack.c.bf16 %v847_v48, %v847_v48 }
 0x5c3   :  { %1385 = vmatmul.mubr.msk.bf16.vlgmr.msra.gmra.mrb[12].mxu0 %vm855_vm2, %v848_v50 }
 0x696   :  { %v893_v53 = vpop.f32.mrb[12].mxu0 }
 0x697   :  { %v894_v56 = vadd.f32 %v1325_v52, %v893_v53  ;;  %v1386_v57 = vpop.f32.mrb[13].mxu0 }
 0x698   :  { %v896_v58 = vpop.f32.mrb[14].mxu0 }
 0x699   :  { %v899_v59 = vadd.f32 %v894_v56, %v843_v55  ;;  %v1387_v60 = vpop.f32.mrb[15].mxu0 }
 0x69b   :  { %v900_v61 = vmax.f32 %v899_v59, 0.0 }
 0x69c   :  { %1750 = dma.done.wait [#allocation4 + $0x1], 1024 }
 0x69d   :  { %1751 = vsyncadd [#allocation4 + $0x1], 4294966272 }
 0x69e   :  { %1752 = dma.done.wait [#allocation4 + $0x3], 256 }
 0x69f   :  { %1753 = vsyncadd [#allocation4 + $0x3], 4294967040  ;;  %v924_v62 = vld [vmem:[%s2300_s17] sm:$0xf]  ;;  %v926_v63 = vld [vmem:[%s2300_s17 + $0x8] sm:$0xf]  ;;  %1057 = vmatprep.mubr.bf16.mxu1 %v1782_v1  ;;  %1388 = vmatprep.subr.bf16.mxu0 %v1788_v54 }
 0x6a0   :  { %v928_v0 = vld [vmem:[%s2300_s17 + $0x4] sm:$0xf]  ;;  %925 = vst [vmem:[#allocation2] sm:$0xf] %v924_v62  ;;  %927 = vst [vmem:[#allocation2 + $0x4] sm:$0xf] %v926_v63  ;;  %1392 = vmatprep.mubr.msk.bf16.mxu0 %vm1789_vm1, %v1788_v54 }
 0x6a1   :  { %929 = vst [vmem:[#allocation2 + $0x8] sm:$0xf] %v928_v0  ;;  %v930_v2 = vld [vmem:[%s2300_s17 + $0xc] sm:$0xf]  ;;  %v932_v3 = vld [vmem:[%s2300_s17 + $0x10] sm:$0xf] }
 0x6a2   :  { %v934_v4 = vld [vmem:[%s2300_s17 + $0x18] sm:$0xf]  ;;  %931 = vst [vmem:[#allocation2 + $0xc] sm:$0xf] %v930_v2  ;;  %933 = vst [vmem:[#allocation2 + $0x20] sm:$0xf] %v932_v3 }
 0x6a3   :  { %935 = vst [vmem:[#allocation2 + $0x24] sm:$0xf] %v934_v4  ;;  %v936_v5 = vld [vmem:[%s2300_s17 + $0x14] sm:$0xf]  ;;  %v938_v6 = vld [vmem:[%s2300_s17 + $0x1c] sm:$0xf] }
 0x6a4   :  { %937 = vst [vmem:[#allocation2 + $0x28] sm:$0xf] %v936_v5  ;;  %939 = vst [vmem:[#allocation2 + $0x2c] sm:$0xf] %v938_v6  ;;  %v1001_v7 = vld [vmem:[#allocation2 + $0x208] sm:$0xff]  ;;  %v1000_v8 = vld [vmem:[#allocation2 + $0x200] sm:$0xff] }
 0x6a5   :  { %v1003_v9 = vld [vmem:[#allocation2 + $0x228] sm:$0xff]  ;;  %1025 = vmatprep.subr.bf16.mxu1 %v1001_v7 }
 0x6a6   :  { %1026 = vmatpush1.bf16.msra.mxu1 %v1000_v8 }
 0x6a7   :  { %986 = vsyncadd [#allocation4], 512  ;;  %1027 = vmatprep.subr.bf16.mxu1 %v1003_v9  ;;  %v1002_v10 = vld [vmem:[#allocation2 + $0x220] sm:$0xff]  ;;  %s1684_s17 = scalar_lea.hbm %s2302_s19, 128 }
 0x6a8   :  { %p1685_p3 = scmp.ne.s32.totalorder %s2302_s19, %s1684_s17  ;;  %p1688_p4 = scmp.lt.u32.totalorder %s1684_s17, %s2302_s19 }
 0x6aa   :  { %p1690_p5 = pnand %p1688_p4, %p1685_p3 }
 0x6ac   :  { %1693 = shalt.err (!%p1690_p5)  }
 0x6ad   :  { %s1694_s23 = scalar_lea.vmem %s2036_s25, 128  ;;  %p1699_p7 = scmp.lt.s32.totalorder %s2036_s25, %s2036_s25 }
 0x6ae   :  { %p1695_p6 = scmp.ne.s32.totalorder %s2036_s25, %s1694_s23  ;;  %p1700_p8 = scmp.lt.s32.totalorder %s2082_s12, %s1694_s23 }
 0x6b0   :  { %p1701_p9 = por %p1700_p8, %p1699_p7 }
 0x6b2   :  { %p1702_p10 = pnand %p1701_p9, %p1695_p6 }
 0x6b4   :  { %1705 = shalt.err (!%p1702_p10)  }
 0x6b5   :  { %997 = dma.hbm_to_vmem [thread:$0]  %s2302_s19, 128, %s2036_s25, [#allocation4 + $0x2]  ;;  %v1005_v11 = vld [vmem:[#allocation2 + $0x248] sm:$0xff]  ;;  %1028 = vmatpush1.bf16.msra.mxu1 %v1002_v10  ;;  %v1004_v12 = vld [vmem:[#allocation2 + $0x240] sm:$0xff]  ;;  %v1010_v15 = vpack.c.bf16 %v900_v61, %v900_v61  ;;  %v998_v18 = vld [vmem:[#allocation17] sm:$0x3] }
 0x6b6   :  { %1029 = vmatprep.subr.bf16.mxu1 %v1005_v11  ;;  %v1007_v13 = vld [vmem:[#allocation2 + $0x268] sm:$0xff]  ;;  %v1006_v14 = vld [vmem:[#allocation2 + $0x260] sm:$0xff]  ;;  %v1009_v17 = vld [vmem:[#allocation3 + $0x110] sm:$0xff]  ;;  %v1015_v19 = vrot.slane %v998_v18, %v2099_v45  ;;  %v1019_v27 = vrot.slane %v998_v18, %v2101_v47 }
 0x6b7   :  { %v1008_v16 = vld [vmem:[#allocation3 + $0x100] sm:$0xff]  ;;  %v1328_v28 = vld [vmem:[#allocation19] ss:$0 sm:$0xff] }
 0x6b8   :  { %1389 = vmatpush3.bf16.msra.mxu0 %v1008_v16 }
 0x6b9   :  { %1030 = vmatpush1.bf16.msra.mxu1 %v1004_v12  ;;  %1390 = vmatprep.subr.bf16.mxu0 %v1788_v54 }
 0x6ba   :  { %1031 = vmatprep.subr.bf16.mxu1 %v1007_v13 }
 0x6bc   :  { %1391 = vmatpush3.bf16.msra.mxu0 %v1009_v17 }
 0x6bd   :  { %1032 = vmatpush1.bf16.msra.mxu1 %v1006_v14 }
 0x6c0   :  { %1327 = vmatmul.mubr.msk.bf16.vlgmr.msra.gmra.mrb[8].mxu1 %vm855_vm2, %v1010_v15 }
 0x793   :  { %v1059_v20 = vpop.f32.mrb[8].mxu1 }
 0x794   :  { %v1060_v21 = vadd.f32 %v1059_v20, %v1015_v19  ;;  %v1061_v22 = vpop.f32.mrb[9].mxu1 }
 0x795   :  { %v1063_v23 = vpop.f32.mrb[10].mxu1  ;;  %v1062_v30 = vadd.f32 %v1061_v22, %v1019_v27 }
 0x796   :  { %v1066_v24 = vmax.f32 %v1060_v21, 0.0  ;;  %v1064_v25 = vpop.f32.mrb[11].mxu1 }
 0x798   :  { %v1067_v26 = vpack.c.bf16 %v1066_v24, %v1066_v24 }
 0x79a   :  { %1393 = vmatmul.mubr.msk.bf16.vlgmr.msra.gmra.mrb[16].mxu0 %vm340_vm0, %v1067_v26 }
 0x86d   :  { %v1111_v29 = vpop.f32.mrb[16].mxu0 }
 0x86e   :  { %v1112_v31 = vadd.f32 %v1328_v28, %v1111_v29  ;;  %v1394_v32 = vpop.f32.mrb[17].mxu0 }
 0x86f   :  { %v1114_v33 = vpop.f32.mrb[18].mxu0 }
 0x870   :  { %v1117_v34 = vadd.f32 %v1112_v31, %v1062_v30  ;;  %v1395_v35 = vpop.f32.mrb[19].mxu0 }
 0x872   :  { %v1118_v36 = vmax.f32 %v1117_v34, 0.0 }
 0x873   :  { %1754 = dma.done.wait [#allocation4], 512 }
 0x874   :  { %1755 = vsyncadd [#allocation4], 4294966784 }
 0x875   :  { %1756 = dma.done.wait [#allocation4 + $0x2], 128 }
 0x876   :  { %1757 = vsyncadd [#allocation4 + $0x2], 4294967168  ;;  %1180 = vmatprep.mubr.bf16.mxu1 %v1782_v1  ;;  %1396 = vmatprep.subr.bf16.mxu0 %v1788_v54  ;;  %v1129_v37 = vld [vmem:[#allocation2 + $0x8] sm:$0xff]  ;;  %v1128_v38 = vld [vmem:[#allocation2] sm:$0xff]  ;;  %v1133_v41 = vpack.c.bf16 %v1118_v36, %v1118_v36  ;;  %vm1197_vm3 = vcmask 130048   ;;  %s1791_s29 = smov [#allocation20]  }
 0x877   :  { %1398 = vmatprep.mubr.msk.bf16.mxu0 %vm1789_vm1, %v1788_v54  ;;  %v1131_v39 = vld [vmem:[#allocation2 + $0x28] sm:$0xff]  ;;  %1148 = vmatprep.subr.bf16.mxu1 %v1129_v37  ;;  %v1130_v40 = vld [vmem:[#allocation2 + $0x20] sm:$0xff]  ;;  %vm1242_vm4 = vcmask 80896  }
 0x878   :  { %1149 = vmatpush1.bf16.msra.mxu1 %v1128_v38  ;;  %v1132_v42 = vld [vmem:[#allocation3] sm:$0xff] }
 0x879   :  { %1150 = vmatprep.subr.bf16.mxu1 %v1131_v39  ;;  %1397 = vmatpush3.bf16.msra.mxu0 %v1132_v42  ;;  %v1126_v1 = vld [vmem:[%s2301_s18] sm:$0x3]  ;;  %s1250_s18 = sshll.u32 %s1791_s29, 4  ;;  %s1251_s18 = int_to_ptr.vmem [resolvable:$true] %s1250_s18 }
 0x87a   :  { %v1138_v43 = vrot.slane %v1126_v1, %v2099_v45  ;;  %v1142_v52 = vrot.slane %v1126_v1, %v2101_v47  ;;  %v1331_v53 = vld [vmem:[%s2303_s20] ss:$0 sm:$0xff]  ;;  %s1706_s5 = scalar_lea.vmem %s1251_s18, 128  ;;  %p1711_p12 = scmp.lt.s32.totalorder %s1251_s18, %s1251_s18 }
 0x87b   :  { %p1707_p11 = scmp.ne.s32.totalorder %s1251_s18, %s1706_s5  ;;  %p1712_p13 = scmp.lt.s32.totalorder %s1706_s5, %s1706_s5 }
 0x87c   :  { %1151 = vmatpush1.bf16.msra.mxu1 %v1130_v40 }
 0x87d   :  { %p1713_p0 = por %p1712_p13, %p1711_p12 }
 0x87f   :  { %1330 = vmatmul.mubr.msk.bf16.vlgmr.msra.gmra.mrb[12].mxu1 %vm340_vm0, %v1133_v41  ;;  %p1714_p1 = pnand %p1713_p0, %p1707_p11 }
 0x952   :  { %v1182_v54 = vpop.f32.mrb[12].mxu1 }
 0x953   :  { %v1183_v44 = vadd.f32 %v1182_v54, %v1138_v43  ;;  %v1184_v46 = vpop.f32.mrb[13].mxu1 }
 0x954   :  { %v1186_v48 = vpop.f32.mrb[14].mxu1  ;;  %v1185_v56 = vadd.f32 %v1184_v46, %v1142_v52 }
 0x955   :  { %v1189_v49 = vmax.f32 %v1183_v44, 0.0  ;;  %v1187_v50 = vpop.f32.mrb[15].mxu1 }
 0x957   :  { %v1190_v51 = vpack.c.bf16 %v1189_v49, %v1189_v49 }
 0x959   :  { %1399 = vmatmul.mubr.msk.bf16.vlgmr.msra.gmra.mrb[20].mxu0 %vm1197_vm3, %v1190_v51 }
 0xa2c   :  { %v1235_v55 = vpop.f32.mrb[20].mxu0 }
 0xa2d   :  { %v1236_v45 = vadd.f32 %v1331_v53, %v1235_v55  ;;  %v1400_v57 = vpop.f32.mrb[21].mxu0 }
 0xa2e   :  { %v1238_v58 = vpop.f32.mrb[22].mxu0 }
 0xa2f   :  { %v1241_v59 = vadd.f32 %v1236_v45, %v1185_v56  ;;  %v1401_v60 = vpop.f32.mrb[23].mxu0 }
 0xa31   :  { %1243 = vst.msk [vmem:[#allocation20] sm:$0xff] %vm1242_vm4, %v1241_v59 }
 0xa32   :  { %1717 = shalt.err (!%p1714_p1)
}
 0xa33   :  { %s1718_s4 = scalar_lea.hbm %s2304_s21, 128 }
 0xa34   :  { %p1719_p2 = scmp.ne.s32.totalorder %s2304_s21, %s1718_s4  ;;  %p1722_p3 = scmp.lt.u32.totalorder %s1718_s4, %s2304_s21 }
 0xa36   :  { %p1724_p4 = pnand %p1722_p3, %p1719_p2 }
 0xa38   :  { %1727 = shalt.err (!%p1724_p4)
}
 0xa39   :  { %1253 = dma.vmem_to_hbm [thread:$0]  %s1251_s18, 128, %s2304_s21, [#allocation7]  }
 0xa3a   :  { %1758 = dma.done.wait [#allocation7], 128  }
 0xa3b   :  { %1759 = vsyncadd [#allocation7], 4294967168 }
 0xa3c   :  { %1257 = vsyncpa [#allocation6], 1 }
 0xa3d   :  { %1258 = vsyncpa [#allocation9], 1 }
 0xa3e   :  { %1259 = vsyncpa [#allocation12], 1 }
 0xa3f   :  { %1260 = vsyncpa [#allocation15], 1 }
 0xa40   :  { %1261 = vsyncpa [#allocation18], 1 }
 0xa41   :  { %1262 = vsyncpa [#allocation7], 1 }
 0xa42   :  { %1263 = vsyncmov [#allocation4] }
 0xa45   :  { %s1264_s22 = vpop.sfrf %1263 }
 0xa46   :  { %p1333_p5 = scmp.ne.s32.totalorder %s1264_s22, 0 }
 0xa48   :  { %1268 = shalt.err (%p1333_p5)  }
 0xa49   :  { %1270 = vsyncmov [#allocation4 + $0x1] }
 0xa4c   :  { %s1271_s24 = vpop.sfrf %1270 }
 0xa4d   :  { %p1334_p6 = scmp.ne.s32.totalorder %s1271_s24, 0 }
 0xa4f   :  { %1275 = shalt.err (%p1334_p6)  }
 0xa50   :  { %1277 = vsyncmov [#allocation4 + $0x2] }
 0xa53   :  { %s1278_s10 = vpop.sfrf %1277 }
 0xa54   :  { %p1335_p7 = scmp.ne.s32.totalorder %s1278_s10, 0 }
 0xa56   :  { %1282 = shalt.err (%p1335_p7)  }
 0xa57   :  { %1284 = vsyncmov [#allocation4 + $0x3] }
 0xa5a   :  { %s1285_s21 = vpop.sfrf %1284 }
 0xa5b   :  { %p1336_p8 = scmp.ne.s32.totalorder %s1285_s21, 0 }
 0xa5d   :  { %1289 = shalt.err (%p1336_p8)  }

</bundles_post_ra>
